<compile_context>
chip_gen: v6e
topology: v6e:2x2x1
jax: 0.10.0
libtpu: 0.0.40
codegen_flags: <defaults>
</compile_context>

<pallas_src>
import functools

import jax
import jax.numpy as jnp
from jax.experimental import pallas as pl
from jax.experimental.pallas import tpu as pltpu


# ----------------------------------------------------------------------------- kernels

def bn1_relu_conv1_kernel(x_ref, scale_ref, shift_ref, w_ref,
                          o_ref, sum_ref, ssq_ref, *, m_total):
    # x_ref: (tm, Cin) f32, scale/shift: (1, Cin) f32, w_ref: (Cin, Cmid) bf16
    # o_ref: (tm, Cmid) f32, sum_ref/ssq_ref: (1, Cmid) f32 accumulators for BN2 stats.
    i = pl.program_id(0)
    tm = x_ref.shape[0]

    a = jnp.maximum(x_ref[...] * scale_ref[...] + shift_ref[...], 0.0)      # f32 VPU
    out = jnp.dot(a.astype(jnp.bfloat16), w_ref[...],
                  preferred_element_type=jnp.float32)                        # (tm, Cmid)
    o_ref[...] = out

    # Masked accumulation of BN2 batch statistics (excludes padded tail rows).
    row = i * tm + jax.lax.broadcasted_iota(jnp.int32, out.shape, 0)
    valid = (row < m_total).astype(jnp.float32)
    ov = out * valid

    @pl.when(i == 0)
    def _init():
        sum_ref[...] = jnp.zeros_like(sum_ref)
        ssq_ref[...] = jnp.zeros_like(ssq_ref)

    sum_ref[...] += jnp.sum(ov, axis=0, keepdims=True)
    ssq_ref[...] += jnp.sum(ov * out, axis=0, keepdims=True)


def bn2_relu_conv3x3_kernel(x_ref, scale_ref, shift_ref, w_ref, o_ref, pad_ref):
    # x_ref: (1, H, W*Cmid) f32 lane-dense slab, scale/shift: (1, W*Cmid) f32
    # w_ref: (3, W*Cmid, W*Cout) bf16 banded weights, o_ref: (1, H, W*Cout) f32
    # pad_ref: VMEM scratch (H+2, W*Cmid) f32 for the H zero-padding.
    H = o_ref.shape[1]

    a = jnp.maximum(x_ref[0] * scale_ref[...] + shift_ref[...], 0.0)        # (H, W*Cmid)

    # Zero-pad in H inside VMEM (rows 0 and H+1 stay zero); W padding is handled by
    # the banded weight matrix (out-of-range taps are simply absent from it).
    pad_ref[...] = jnp.zeros_like(pad_ref)
    pad_ref[pl.ds(1, H), :] = a

    # 3x3 conv as three row-shifted matmuls, f32 accumulation on the MXU.
    acc = jnp.zeros(o_ref.shape[1:], jnp.float32)                           # (H, W*Cout)
    for dy in range(3):
        acc = acc + jnp.dot(pad_ref[pl.ds(dy, H), :].astype(jnp.bfloat16),
                            w_ref[dy],
                            preferred_element_type=jnp.float32)
    o_ref[0] = acc


# ----------------------------------------------------------------------------- wrappers

def _bn1_relu_conv1(x2d, scale1, shift1, w1_bf16, tm=512):
    M, Cin = x2d.shape
    Cmid = w1_bf16.shape[1]
    tm = min(tm, M)
    grid_m = pl.cdiv(M, tm)
    m_pad = grid_m * tm
    x_in = x2d if m_pad == M else jnp.pad(x2d, ((0, m_pad - M), (0, 0)))

    out1, s, ss = pl.pallas_call(
        functools.partial(bn1_relu_conv1_kernel, m_total=M),
        out_shape=(jax.ShapeDtypeStruct((m_pad, Cmid), jnp.float32),
                   jax.ShapeDtypeStruct((1, Cmid), jnp.float32),
                   jax.ShapeDtypeStruct((1, Cmid), jnp.float32)),
        grid=(grid_m,),
        in_specs=[
            pl.BlockSpec((tm, Cin), lambda i: (i, 0)),
            pl.BlockSpec((1, Cin), lambda i: (0, 0)),
            pl.BlockSpec((1, Cin), lambda i: (0, 0)),
            pl.BlockSpec((Cin, Cmid), lambda i: (0, 0)),
        ],
        out_specs=(
            pl.BlockSpec((tm, Cmid), lambda i: (i, 0)),
            pl.BlockSpec((1, Cmid), lambda i: (0, 0)),
            pl.BlockSpec((1, Cmid), lambda i: (0, 0)),
        ),
        compiler_params=pltpu.CompilerParams(
            dimension_semantics=("arbitrary",)),   # stats accumulate across M tiles
    )(x_in, scale1, shift1, w1_bf16)
    return out1[:M], s[0], ss[0]


def _bn2_relu_conv2(out1_img, scale2_t, shift2_t, wband_bf16):
    N, H, WCm = out1_img.shape
    WCout = wband_bf16.shape[-1]
    return pl.pallas_call(
        bn2_relu_conv3x3_kernel,
        out_shape=jax.ShapeDtypeStruct((N, H, WCout), jnp.float32),
        grid=(N,),
        in_specs=[
            pl.BlockSpec((1, H, WCm), lambda n: (n, 0, 0)),
            pl.BlockSpec((1, WCm), lambda n: (0, 0)),
            pl.BlockSpec((1, WCm), lambda n: (0, 0)),
            pl.BlockSpec((3, WCm, WCout), lambda n: (0, 0, 0)),
        ],
        out_specs=pl.BlockSpec((1, H, WCout), lambda n: (n, 0, 0)),
        scratch_shapes=[pltpu.VMEM((H + 2, WCm), jnp.float32)],
        compiler_params=pltpu.CompilerParams(
            dimension_semantics=("parallel",)),    # one image per grid step (megacore)
    )(out1_img, scale2_t, shift2_t, wband_bf16)


def _banded_conv3x3_weights(w2, W):
    """w2: (Cout, Cmid, 3, 3) OIHW -> (3, W*Cmid, W*Cout) banded matrices (one per dy)."""
    Cout, Cmid, KH, KW = w2.shape
    w_hwio = jnp.transpose(w2, (2, 3, 1, 0)).astype(jnp.float32)   # (3, 3, Cmid, Cout)
    # onehot[w, dx, i] = 1 iff input column i == w + dx - 1 (edge taps drop out => W pad)
    win = jnp.arange(W)[:, None] + jnp.arange(KW)[None, :] - 1      # (W, KW)
    onehot = (win[..., None] == jnp.arange(W)[None, None, :]).astype(jnp.float32)
    wband = jnp.einsum('wxi,yxkc->yikwc', onehot, w_hwio)           # (KH, W, Cmid, W, Cout)
    return wband.reshape(KH, W * Cmid, W * Cout)


def dense_layer_forward(x, gamma1, beta1, w1, gamma2, beta2, w2, eps=1e-5):
    """x: (N, Cin, H, W) NCHW. w1: (4g, Cin, 1, 1), w2: (g, 4g, 3, 3) OIHW (PyTorch)."""
    N, Cin, H, W = x.shape
    Cmid = w1.shape[0]
    Cout = w2.shape[0]
    M = N * H * W

    x_nhwc = jnp.transpose(x, (0, 2, 3, 1)).astype(jnp.float32)
    x2d = x_nhwc.reshape(M, Cin)

    # BN1 training-mode batch statistics folded into per-channel scale/shift (tiny XLA reduce).
    mean1 = jnp.mean(x2d, axis=0)
    var1 = jnp.var(x2d, axis=0)
    scale1 = gamma1 / jnp.sqrt(var1 + eps)
    shift1 = beta1 - mean1 * scale1

    w1_mat = jnp.transpose(w1[:, :, 0, 0], (1, 0)).astype(jnp.bfloat16)     # (Cin, Cmid)

    # Kernel A: BN1 + ReLU + 1x1 conv, fused with BN2 sum / sum-of-squares accumulation.
    out1, s1, ss1 = _bn1_relu_conv1(x2d, scale1[None, :], shift1[None, :], w1_mat)

    mean2 = s1 / M
    var2 = jnp.maximum(ss1 / M - mean2 * mean2, 0.0)     # biased batch variance
    scale2 = gamma2 / jnp.sqrt(var2 + eps)
    shift2 = beta2 - mean2 * scale2

    # Kernel B operates on a lane-dense (N, H, W*Cmid) slab (free row-major reshape).
    out1_img = out1.reshape(N, H, W * Cmid)
    scale2_t = jnp.tile(scale2, W)[None, :]              # (1, W*Cmid)
    shift2_t = jnp.tile(shift2, W)[None, :]
    wband = _banded_conv3x3_weights(w2, W).astype(jnp.bfloat16)

    out2 = _bn2_relu_conv2(out1_img, scale2_t, shift2_t, wband)     # (N, H, W*Cout)
    out2_nchw = jnp.transpose(out2.reshape(N, H, W, Cout), (0, 3, 1, 2))
    return jnp.concatenate([x, out2_nchw.astype(x.dtype)], axis=1)  # (N, Cin + g, H, W)


# ----------------------------------------------------------------------------- reference

def reference_forward(x, gamma1, beta1, w1, gamma2, beta2, w2, eps=1e-5):
    hp = jax.lax.Precision.HIGHEST

    def bn(h, g, b):
        m = h.mean(axis=(0, 2, 3), keepdims=True)
        v = jnp.var(h, axis=(0, 2, 3), keepdims=True)
        return (h - m) / jnp.sqrt(v + eps) * g[None, :, None, None] + b[None, :, None, None]

    h = jnp.maximum(bn(x, gamma1, beta1), 0.0)
    out1 = jax.lax.conv_general_dilated(
        h, w1, (1, 1), 'VALID', dimension_numbers=('NCHW', 'OIHW', 'NCHW'), precision=hp)
    h2 = jnp.maximum(bn(out1, gamma2, beta2), 0.0)
    out2 = jax.lax.conv_general_dilated(
        h2, w2, (1, 1), ((1, 1), (1, 1)),
        dimension_numbers=('NCHW', 'OIHW', 'NCHW'), precision=hp)
    return jnp.concatenate([x, out2], axis=1)


# ----------------------------------------------------------------------------- main

if __name__ == "__main__":
    N, Cin, H, W = 2, 16, 16, 16
    growth_rate = 8
    Cmid = 4 * growth_rate           # 32
    g = growth_rate                  # 8  -> W*Cout = 128 (lane-dense conv output)

    key = jax.random.PRNGKey(0)
    ks = jax.random.split(key, 7)
    x = jax.random.normal(ks[0], (N, Cin, H, W), jnp.float32)
    gamma1 = 1.0 + 0.1 * jax.random.normal(ks[1], (Cin,), jnp.float32)
    beta1 = 0.1 * jax.random.normal(ks[2], (Cin,), jnp.float32)
    w1 = 0.2 * jax.random.normal(ks[3], (Cmid, Cin, 1, 1), jnp.float32)     # OIHW
    gamma2 = 1.0 + 0.1 * jax.random.normal(ks[4], (Cmid,), jnp.float32)
    beta2 = 0.1 * jax.random.normal(ks[5], (Cmid,), jnp.float32)
    w2 = 0.1 * jax.random.normal(ks[6], (g, Cmid, 3, 3), jnp.float32)       # OIHW

    fwd = jax.jit(dense_layer_forward)
    out = jax.block_until_ready(fwd(x, gamma1, beta1, w1, gamma2, beta2, w2))
    assert out.shape == (N, Cin + g, H, W), out.shape

    ref = reference_forward(x, gamma1, beta1, w1, gamma2, beta2, w2)
    max_err = float(jnp.max(jnp.abs(out - ref)))
    # bf16 MXU inputs (f32 accumulation) -> slightly looser tolerance than pure f32.
    assert max_err < 5e-2, f"max abs error {max_err}"

    # TODO(synk): BatchNorm running-stat buffer updates (training-mode side effect) are not
    # modeled; they do not affect the forward output.
    print("KERNEL_OK")
</pallas_src>

<mosaic_0001>
module attributes {stable_mosaic.version = 11 : i64} {
  func.func @bn1_relu_conv1_kernel(%arg0: i32, %arg1: memref<512x16xf32, #tpu.memory_space<vmem>>, %arg2: memref<1x16xf32, #tpu.memory_space<vmem>>, %arg3: memref<1x16xf32, #tpu.memory_space<vmem>>, %arg4: memref<16x32xbf16, #tpu.memory_space<vmem>>, %arg5: memref<512x32xf32, #tpu.memory_space<vmem>>, %arg6: memref<1x32xf32, #tpu.memory_space<vmem>>, %arg7: memref<1x32xf32, #tpu.memory_space<vmem>>) attributes {dimension_semantics = [#tpu.dimension_semantics<arbitrary>], iteration_bounds = array<i64: 1>, scalar_prefetch = 0 : i64, scratch_operands = 0 : i64, tpu.core_type = #tpu.core_type<tc>, window_params = [{transform_indices = @transform_0, window_bounds = array<i64: 512, 16>}, {pipeline_mode = #tpu.pipeline_mode<synchronous>, transform_indices = @transform_1, window_bounds = array<i64: 1, 16>}, {pipeline_mode = #tpu.pipeline_mode<synchronous>, transform_indices = @transform_2, window_bounds = array<i64: 1, 16>}, {pipeline_mode = #tpu.pipeline_mode<synchronous>, transform_indices = @transform_3, window_bounds = array<i64: 16, 32>}, {transform_indices = @transform_4, window_bounds = array<i64: 512, 32>}, {pipeline_mode = #tpu.pipeline_mode<synchronous>, transform_indices = @transform_5, window_bounds = array<i64: 1, 32>}, {pipeline_mode = #tpu.pipeline_mode<synchronous>, transform_indices = @transform_6, window_bounds = array<i64: 1, 32>}]} {
    %c0 = arith.constant 0 : index
    %c0_0 = arith.constant 0 : index
    %0 = vector.load %arg1[%c0, %c0_0] : memref<512x16xf32, #tpu.memory_space<vmem>>, vector<512x16xf32>
    %c0_1 = arith.constant 0 : index
    %c0_2 = arith.constant 0 : index
    %1 = vector.load %arg2[%c0_1, %c0_2] : memref<1x16xf32, #tpu.memory_space<vmem>>, vector<1x16xf32>
    %2 = vector.broadcast %1 : vector<1x16xf32> to vector<512x16xf32>
    %3 = arith.mulf %0, %2 : vector<512x16xf32>
    %c0_3 = arith.constant 0 : index
    %c0_4 = arith.constant 0 : index
    %4 = vector.load %arg3[%c0_3, %c0_4] : memref<1x16xf32, #tpu.memory_space<vmem>>, vector<1x16xf32>
    %5 = vector.broadcast %4 : vector<1x16xf32> to vector<512x16xf32>
    %6 = arith.addf %3, %5 : vector<512x16xf32>
    %cst = arith.constant 0.000000e+00 : f32
    %7 = vector.broadcast %cst : f32 to vector<512x16xf32>
    %8 = arith.maximumf %6, %7 : vector<512x16xf32>
    %9 = arith.truncf %8 : vector<512x16xf32> to vector<512x16xbf16>
    %c0_5 = arith.constant 0 : index
    %c0_6 = arith.constant 0 : index
    %10 = vector.load %arg4[%c0_5, %c0_6] : memref<16x32xbf16, #tpu.memory_space<vmem>>, vector<16x32xbf16>
    %cst_7 = arith.constant dense<0.000000e+00> : vector<512x32xf32>
    %11 = tpu.matmul %9, %10, %cst_7 {dimension_numbers = #tpu.dot_dimension_numbers<[1], [0], [0], [1], [0, 0, 1, 1], [], []>} : vector<512x16xbf16>, vector<16x32xbf16>, vector<512x32xf32> -> vector<512x32xf32>
    %c0_8 = arith.constant 0 : index
    %c0_9 = arith.constant 0 : index
    %12 = vector.load %arg5[%c0_8, %c0_9] : memref<512x32xf32, #tpu.memory_space<vmem>>, vector<512x32xf32>
    tpu.vector_store %arg5[%c0_8, %c0_9], %11 {strides = array<i32>} : memref<512x32xf32, #tpu.memory_space<vmem>>, vector<512x32xf32>,
    %c512_i32 = arith.constant 512 : i32
    %13 = arith.muli %arg0, %c512_i32 : i32
    %14 = tpu.iota {dimensions = array<i32: 0>} : vector<512x32xi32>
    %15 = vector.broadcast %13 : i32 to vector<512x32xi32>
    %16 = arith.addi %15, %14 : vector<512x32xi32>
    %c512_i32_10 = arith.constant 512 : i32
    %17 = vector.broadcast %c512_i32_10 : i32 to vector<512x32xi32>
    %18 = arith.cmpi slt, %16, %17 : vector<512x32xi32>
    %19 = arith.extui %18 : vector<512x32xi1> to vector<512x32xi32>
    %20 = arith.sitofp %19 : vector<512x32xi32> to vector<512x32xf32>
    %21 = arith.mulf %11, %20 : vector<512x32xf32>
    %c0_i32 = arith.constant 0 : i32
    %22 = arith.cmpi eq, %arg0, %c0_i32 : i32
    %23 = arith.extui %22 : i1 to i32
    %c0_i32_11 = arith.constant 0 : i32
    %24 = arith.cmpi ne, %23, %c0_i32_11 : i32
    scf.if %24 {
      %cst_22 = arith.constant 0.000000e+00 : f32
      %36 = vector.broadcast %cst_22 : f32 to vector<1x32xf32>
      %c0_23 = arith.constant 0 : index
      %c0_24 = arith.constant 0 : index
      %37 = vector.load %arg6[%c0_23, %c0_24] : memref<1x32xf32, #tpu.memory_space<vmem>>, vector<1x32xf32>
      tpu.vector_store %arg6[%c0_23, %c0_24], %36 {strides = array<i32>} : memref<1x32xf32, #tpu.memory_space<vmem>>, vector<1x32xf32>,
      %cst_25 = arith.constant 0.000000e+00 : f32
      %38 = vector.broadcast %cst_25 : f32 to vector<1x32xf32>
      %c0_26 = arith.constant 0 : index
      %c0_27 = arith.constant 0 : index
      %39 = vector.load %arg7[%c0_26, %c0_27] : memref<1x32xf32, #tpu.memory_space<vmem>>, vector<1x32xf32>
      tpu.vector_store %arg7[%c0_26, %c0_27], %38 {strides = array<i32>} : memref<1x32xf32, #tpu.memory_space<vmem>>, vector<1x32xf32>,
    } else {
    }
    %c0_12 = arith.constant 0 : index
    %c0_13 = arith.constant 0 : index
    %25 = vector.load %arg6[%c0_12, %c0_13] : memref<1x32xf32, #tpu.memory_space<vmem>>, vector<1x32xf32>
    %cst_14 = arith.constant dense<0.000000e+00> : vector<32xf32>
    %26 = vector.multi_reduction <add>, %21, %cst_14 [0] : vector<512x32xf32> to vector<32xf32>
    %27 = vector.shape_cast %26 : vector<32xf32> to vector<1x32xf32>
    %28 = arith.addf %25, %27 : vector<1x32xf32>
    %c0_15 = arith.constant 0 : index
    %c0_16 = arith.constant 0 : index
    %29 = vector.load %arg6[%c0_15, %c0_16] : memref<1x32xf32, #tpu.memory_space<vmem>>, vector<1x32xf32>
    tpu.vector_store %arg6[%c0_15, %c0_16], %28 {strides = array<i32>} : memref<1x32xf32, #tpu.memory_space<vmem>>, vector<1x32xf32>,
    %c0_17 = arith.constant 0 : index
    %c0_18 = arith.constant 0 : index
    %30 = vector.load %arg7[%c0_17, %c0_18] : memref<1x32xf32, #tpu.memory_space<vmem>>, vector<1x32xf32>
    %31 = arith.mulf %21, %11 : vector<512x32xf32>
    %cst_19 = arith.constant dense<0.000000e+00> : vector<32xf32>
    %32 = vector.multi_reduction <add>, %31, %cst_19 [0] : vector<512x32xf32> to vector<32xf32>
    %33 = vector.shape_cast %32 : vector<32xf32> to vector<1x32xf32>
    %34 = arith.addf %30, %33 : vector<1x32xf32>
    %c0_20 = arith.constant 0 : index
    %c0_21 = arith.constant 0 : index
    %35 = vector.load %arg7[%c0_20, %c0_21] : memref<1x32xf32, #tpu.memory_space<vmem>>, vector<1x32xf32>
    tpu.vector_store %arg7[%c0_20, %c0_21], %34 {strides = array<i32>} : memref<1x32xf32, #tpu.memory_space<vmem>>, vector<1x32xf32>,
    return
  }
  func.func @transform_0(%arg0: i32) -> (i32, i32) {
    %c0_i32 = arith.constant 0 : i32
    %c0_i32_0 = arith.constant 0 : i32
    return %arg0, %c0_i32 : i32, i32
  }
  func.func @transform_1(%arg0: i32) -> (i32, i32) {
    %c0_i32 = arith.constant 0 : i32
    %c0_i32_0 = arith.constant 0 : i32
    %c0_i32_1 = arith.constant 0 : i32
    return %c0_i32, %c0_i32_0 : i32, i32
  }
  func.func @transform_2(%arg0: i32) -> (i32, i32) {
    %c0_i32 = arith.constant 0 : i32
    %c0_i32_0 = arith.constant 0 : i32
    %c0_i32_1 = arith.constant 0 : i32
    return %c0_i32, %c0_i32_0 : i32, i32
  }
  func.func @transform_3(%arg0: i32) -> (i32, i32) {
    %c0_i32 = arith.constant 0 : i32
    %c0_i32_0 = arith.constant 0 : i32
    %c0_i32_1 = arith.constant 0 : i32
    return %c0_i32, %c0_i32_0 : i32, i32
  }
  func.func @transform_4(%arg0: i32) -> (i32, i32) {
    %c0_i32 = arith.constant 0 : i32
    %c0_i32_0 = arith.constant 0 : i32
    return %arg0, %c0_i32 : i32, i32
  }
  func.func @transform_5(%arg0: i32) -> (i32, i32) {
    %c0_i32 = arith.constant 0 : i32
    %c0_i32_0 = arith.constant 0 : i32
    %c0_i32_1 = arith.constant 0 : i32
    return %c0_i32, %c0_i32_0 : i32, i32
  }
  func.func @transform_6(%arg0: i32) -> (i32, i32) {
    %c0_i32 = arith.constant 0 : i32
    %c0_i32_0 = arith.constant 0 : i32
    %c0_i32_1 = arith.constant 0 : i32
    return %c0_i32, %c0_i32_0 : i32, i32
  }
}

module attributes {stable_mosaic.version = 11 : i64} {
  func.func @bn2_relu_conv3x3_kernel(%arg0: i32, %arg1: memref<1x16x512xf32, #tpu.memory_space<vmem>>, %arg2: memref<1x512xf32, #tpu.memory_space<vmem>>, %arg3: memref<1x512xf32, #tpu.memory_space<vmem>>, %arg4: memref<3x512x128xbf16, #tpu.memory_space<vmem>>, %arg5: memref<1x16x128xf32, #tpu.memory_space<vmem>>, %arg6: memref<18x512xf32, #tpu.memory_space<vmem>>) attributes {dimension_semantics = [#tpu.dimension_semantics<parallel>], iteration_bounds = array<i64: 2>, scalar_prefetch = 0 : i64, scratch_operands = 1 : i64, tpu.core_type = #tpu.core_type<tc>, window_params = [{transform_indices = @transform_0, window_bounds = array<i64: 1, 16, 512>}, {pipeline_mode = #tpu.pipeline_mode<synchronous>, transform_indices = @transform_1, window_bounds = array<i64: 1, 512>}, {pipeline_mode = #tpu.pipeline_mode<synchronous>, transform_indices = @transform_2, window_bounds = array<i64: 1, 512>}, {pipeline_mode = #tpu.pipeline_mode<synchronous>, transform_indices = @transform_3, window_bounds = array<i64: 3, 512, 128>}, {transform_indices = @transform_4, window_bounds = array<i64: 1, 16, 128>}]} {
    %c0 = arith.constant 0 : index
    %c0_0 = arith.constant 0 : index
    %c0_1 = arith.constant 0 : index
    %0 = vector.load %arg1[%c0, %c0_0, %c0_1] : memref<1x16x512xf32, #tpu.memory_space<vmem>>, vector<1x16x512xf32>
    %1 = vector.shape_cast %0 : vector<1x16x512xf32> to vector<16x512xf32>
    %c0_2 = arith.constant 0 : index
    %c0_3 = arith.constant 0 : index
    %2 = vector.load %arg2[%c0_2, %c0_3] : memref<1x512xf32, #tpu.memory_space<vmem>>, vector<1x512xf32>
    %3 = vector.broadcast %2 : vector<1x512xf32> to vector<16x512xf32>
    %4 = arith.mulf %1, %3 : vector<16x512xf32>
    %c0_4 = arith.constant 0 : index
    %c0_5 = arith.constant 0 : index
    %5 = vector.load %arg3[%c0_4, %c0_5] : memref<1x512xf32, #tpu.memory_space<vmem>>, vector<1x512xf32>
    %6 = vector.broadcast %5 : vector<1x512xf32> to vector<16x512xf32>
    %7 = arith.addf %4, %6 : vector<16x512xf32>
    %cst = arith.constant 0.000000e+00 : f32
    %8 = vector.broadcast %cst : f32 to vector<16x512xf32>
    %9 = arith.maximumf %7, %8 : vector<16x512xf32>
    %cst_6 = arith.constant 0.000000e+00 : f32
    %10 = vector.broadcast %cst_6 : f32 to vector<18x512xf32>
    %c0_7 = arith.constant 0 : index
    %c0_8 = arith.constant 0 : index
    %11 = vector.load %arg6[%c0_7, %c0_8] : memref<18x512xf32, #tpu.memory_space<vmem>>, vector<18x512xf32>
    tpu.vector_store %arg6[%c0_7, %c0_8], %10 {strides = array<i32>} : memref<18x512xf32, #tpu.memory_space<vmem>>, vector<18x512xf32>,
    %c1 = arith.constant 1 : index
    %c0_9 = arith.constant 0 : index
    %12 = vector.load %arg6[%c1, %c0_9] : memref<18x512xf32, #tpu.memory_space<vmem>>, vector<16x512xf32>
    tpu.vector_store %arg6[%c1, %c0_9], %9 {strides = array<i32>} : memref<18x512xf32, #tpu.memory_space<vmem>>, vector<16x512xf32>,
    %cst_10 = arith.constant 0.000000e+00 : f32
    %13 = vector.broadcast %cst_10 : f32 to vector<16x128xf32>
    %c0_11 = arith.constant 0 : index
    %c0_12 = arith.constant 0 : index
    %14 = vector.load %arg6[%c0_11, %c0_12] : memref<18x512xf32, #tpu.memory_space<vmem>>, vector<16x512xf32>
    %15 = arith.truncf %14 : vector<16x512xf32> to vector<16x512xbf16>
    %c0_13 = arith.constant 0 : index
    %c0_14 = arith.constant 0 : index
    %c0_15 = arith.constant 0 : index
    %16 = vector.load %arg4[%c0_13, %c0_14, %c0_15] : memref<3x512x128xbf16, #tpu.memory_space<vmem>>, vector<1x512x128xbf16>
    %17 = vector.shape_cast %16 : vector<1x512x128xbf16> to vector<512x128xbf16>
    %cst_16 = arith.constant dense<0.000000e+00> : vector<16x128xf32>
    %18 = tpu.matmul %15, %17, %cst_16 {dimension_numbers = #tpu.dot_dimension_numbers<[1], [0], [0], [1], [0, 0, 1, 1], [], []>} : vector<16x512xbf16>, vector<512x128xbf16>, vector<16x128xf32> -> vector<16x128xf32>
    %19 = arith.addf %13, %18 : vector<16x128xf32>
    %c1_17 = arith.constant 1 : index
    %c0_18 = arith.constant 0 : index
    %20 = vector.load %arg6[%c1_17, %c0_18] : memref<18x512xf32, #tpu.memory_space<vmem>>, vector<16x512xf32>
    %21 = arith.truncf %20 : vector<16x512xf32> to vector<16x512xbf16>
    %c1_19 = arith.constant 1 : index
    %c0_20 = arith.constant 0 : index
    %c0_21 = arith.constant 0 : index
    %22 = vector.load %arg4[%c1_19, %c0_20, %c0_21] : memref<3x512x128xbf16, #tpu.memory_space<vmem>>, vector<1x512x128xbf16>
    %23 = vector.shape_cast %22 : vector<1x512x128xbf16> to vector<512x128xbf16>
    %cst_22 = arith.constant dense<0.000000e+00> : vector<16x128xf32>
    %24 = tpu.matmul %21, %23, %cst_22 {dimension_numbers = #tpu.dot_dimension_numbers<[1], [0], [0], [1], [0, 0, 1, 1], [], []>} : vector<16x512xbf16>, vector<512x128xbf16>, vector<16x128xf32> -> vector<16x128xf32>
    %25 = arith.addf %19, %24 : vector<16x128xf32>
    %c2 = arith.constant 2 : index
    %c0_23 = arith.constant 0 : index
    %26 = vector.load %arg6[%c2, %c0_23] : memref<18x512xf32, #tpu.memory_space<vmem>>, vector<16x512xf32>
    %27 = arith.truncf %26 : vector<16x512xf32> to vector<16x512xbf16>
    %c2_24 = arith.constant 2 : index
    %c0_25 = arith.constant 0 : index
    %c0_26 = arith.constant 0 : index
    %28 = vector.load %arg4[%c2_24, %c0_25, %c0_26] : memref<3x512x128xbf16, #tpu.memory_space<vmem>>, vector<1x512x128xbf16>
    %29 = vector.shape_cast %28 : vector<1x512x128xbf16> to vector<512x128xbf16>
    %cst_27 = arith.constant dense<0.000000e+00> : vector<16x128xf32>
    %30 = tpu.matmul %27, %29, %cst_27 {dimension_numbers = #tpu.dot_dimension_numbers<[1], [0], [0], [1], [0, 0, 1, 1], [], []>} : vector<16x512xbf16>, vector<512x128xbf16>, vector<16x128xf32> -> vector<16x128xf32>
    %31 = arith.addf %25, %30 : vector<16x128xf32>
    %c0_28 = arith.constant 0 : index
    %c0_29 = arith.constant 0 : index
    %c0_30 = arith.constant 0 : index
    %32 = vector.load %arg5[%c0_28, %c0_29, %c0_30] : memref<1x16x128xf32, #tpu.memory_space<vmem>>, vector<1x16x128xf32>
    %33 = vector.shape_cast %32 : vector<1x16x128xf32> to vector<16x128xf32>
    %34 = vector.shape_cast %31 : vector<16x128xf32> to vector<1x16x128xf32>
    tpu.vector_store %arg5[%c0_28, %c0_29, %c0_30], %34 {strides = array<i32>} : memref<1x16x128xf32, #tpu.memory_space<vmem>>, vector<1x16x128xf32>,
    return
  }
  func.func @transform_0(%arg0: i32) -> (i32, i32, i32) {
    %c0_i32 = arith.constant 0 : i32
    %c0_i32_0 = arith.constant 0 : i32
    %c0_i32_1 = arith.constant 0 : i32
    return %arg0, %c0_i32, %c0_i32_0 : i32, i32, i32
  }
  func.func @transform_1(%arg0: i32) -> (i32, i32) {
    %c0_i32 = arith.constant 0 : i32
    %c0_i32_0 = arith.constant 0 : i32
    %c0_i32_1 = arith.constant 0 : i32
    return %c0_i32, %c0_i32_0 : i32, i32
  }
  func.func @transform_2(%arg0: i32) -> (i32, i32) {
    %c0_i32 = arith.constant 0 : i32
    %c0_i32_0 = arith.constant 0 : i32
    %c0_i32_1 = arith.constant 0 : i32
    return %c0_i32, %c0_i32_0 : i32, i32
  }
  func.func @transform_3(%arg0: i32) -> (i32, i32, i32) {
    %c0_i32 = arith.constant 0 : i32
    %c0_i32_0 = arith.constant 0 : i32
    %c0_i32_1 = arith.constant 0 : i32
    %c0_i32_2 = arith.constant 0 : i32
    return %c0_i32, %c0_i32_0, %c0_i32_1 : i32, i32, i32
  }
  func.func @transform_4(%arg0: i32) -> (i32, i32, i32) {
    %c0_i32 = arith.constant 0 : i32
    %c0_i32_0 = arith.constant 0 : i32
    %c0_i32_1 = arith.constant 0 : i32
    return %arg0, %c0_i32, %c0_i32_0 : i32, i32, i32
  }
}

</mosaic_0001>

<bundles_post_ra>
// kernel: tile.13
= control target key start
LH: loop header
LB: loop body
LE: loop exit
PB: predicated region body
PF: predicated region fallthrough
CT: control target
= control target key end

     0   :  { %s28_s0 = inlined_call_operand.vmem [shape: f32[32], index: 0, kind: input, shape index: {}]   ;;  %s29_s1 = inlined_call_operand.vmem [shape: f32[16,32], index: 1, kind: output, shape index: {}]  }
   0x1   :  { %v4_v0 = vld [vmem:[%s28_s0] ss:$0 sm:$0xff] }
   0x2   :  { %5 = vst [vmem:[%s29_s1] sm:$0xff] %v4_v0  ;;  %8 = vst [vmem:[%s29_s1 + $0x8] sm:$0xff] %v4_v0 }

// kernel: tile.14
= control target key start
LH: loop header
LB: loop body
LE: loop exit
PB: predicated region body
PF: predicated region fallthrough
CT: control target
= control target key end

     0   :  { %s62_s8 = smov 96   ;;  %vm3_vm0 = vcmask 261120   ;;  %s64_s15 = smov 64   ;;  %vm9_vm1 = vcmask 1048320   ;;  %vm15_vm2 = vcmask 785920   ;;  %vm21_vm3 = vcmask 523520   ;;  %s99_s0 = inlined_call_operand.vmem [shape: f32[16,32], index: 0, kind: input, shape index: {}]   ;;  %s100_s1 = inlined_call_operand.vmem [shape: f32[1,512], index: 1, kind: output, shape index: {}]  }
   0x1   :  { %v53_v0 = vld [vmem:[%s99_s0 + $0x3] ss:$4 sm:$0xf]   ;;  %v54_v1 = vld [vmem:[%s99_s0 + $0x2] ss:$4 sm:$0xf]  }
   0x2   :  { %7 = vrot.lane.b32.xlu0 %v53_v0, %s62_s8  ;;  %v55_v2 = vld [vmem:[%s99_s0 + $0x1] ss:$4 sm:$0xf]   ;;  %v2_v3 = vld [vmem:[%s99_s0] ss:$4 sm:$0xf]  }
   0x3   :  { %s63_s0 = smov 32   ;;  %4 = vst.msk [vmem:[#allocation0] ss:$8 sm:$0xf] %vm3_vm0, %v2_v3  }
   0x4   :  { %19 = vrot.lane.b32.xlu1 %v55_v2, %s63_s0 }
   0x6   :  { %13 = vrot.lane.b32.xlu0 %v54_v1, %s64_s15 }
  0x74   :  { %v8_v4 = vpop.permute.xlu0 %7  }
  0x75   :  { %10 = vst.msk [vmem:[#allocation0] ss:$8 sm:$0xf] %vm9_vm1, %v8_v4  }
  0x76   :  { %v20_v5 = vpop.permute.xlu1 %19  }
  0x78   :  { %v14_v6 = vpop.permute.xlu0 %13  }
  0x79   :  { %16 = vst.msk [vmem:[#allocation0] ss:$8 sm:$0xf] %vm15_vm2, %v14_v6  }
  0x7a   :  { %22 = vst.msk [vmem:[#allocation0] ss:$8 sm:$0xf] %vm21_vm3, %v20_v5  }
  0x81   :  { %v27_v7 = vld [vmem:[#allocation0] sm:$0x1]  ;;  %v32_v8 = vld [vmem:[#allocation0 + $0x8] sm:$0x1]  ;;  %v38_v9 = vld [vmem:[#allocation0 + $0x10] sm:$0x1] }
  0x82   :  { %30 = vst [vmem:[%s100_s1] sm:$0x1] %v27_v7  ;;  %56 = vst [vmem:[%s100_s1 + $0x1] sm:$0x1] %v32_v8  ;;  %v45_v10 = vld [vmem:[#allocation0 + $0x18] sm:$0x1] }
  0x83   :  { %57 = vst [vmem:[%s100_s1 + $0x2] sm:$0x1] %v38_v9  ;;  %58 = vst [vmem:[%s100_s1 + $0x3] sm:$0x1] %v45_v10 }

// kernel: dense_layer_forward.2
= control target key start
LH: loop header
LB: loop body
LE: loop exit
PB: predicated region body
PF: predicated region fallthrough
CT: control target
= control target key end

     0   :  { %vm331_vm0 = vcmask 130048   ;;  %vm717_vm1 = vcmask 261120   ;;  %vm1173_vm2 = vcmask 253952   ;;  %s2729_s3 = inlined_call_operand.vmem [shape: bf16[16,32], index: 3, kind: input, shape index: {}]   ;;  %s2730_s0 = inlined_call_operand.vmem [shape: f32[512,16], index: 0, kind: input, shape index: {}]   ;;  %s2731_s1 = inlined_call_operand.vmem [shape: f32[1,16], index: 1, kind: input, shape index: {}]   ;;  %s2732_s2 = inlined_call_operand.vmem [shape: f32[1,16], index: 2, kind: input, shape index: {}]   ;;  %s2733_s4 = inlined_call_operand.vmem [shape: f32[512,32], index: 4, kind: output, shape index: {0}]   ;;  %s2734_s5 = inlined_call_operand.vmem [shape: f32[1,32], index: 5, kind: output, shape index: {1}]   ;;  %s2735_s6 = inlined_call_operand.vmem [shape: f32[1,32], index: 6, kind: output, shape index: {2}]  }
   0x1   :  { %v1662_v0 = vld [vmem:[%s2729_s3] sm:$0xff]   ;;  %v22_v2 = vld [vmem:[%s2730_s0 + $0x8] sm:$0xff]  ;;  %v23_v7 = vld [vmem:[%s2730_s0 + $0x10] sm:$0xff] }
   0x2   :  { %v21_v1 = vld [vmem:[%s2730_s0] sm:$0xff]  ;;  %1593 = vmatprep.subr.bf16.mxu0 %v1662_v0  ;;  %v24_v8 = vld [vmem:[%s2730_s0 + $0x18] sm:$0xff]  ;;  %1659 = vmatprep.subr.bf16.mxu1 %v1662_v0  ;;  %v26_v12 = vld [vmem:[%s2730_s0 + $0x28] sm:$0xff] }
   0x3   :  { %v1711_v3 = vld [vmem:[%s2731_s1] ss:$0 sm:$0xff]  ;;  %1594 = vmatpush3.bf16.msra.mxu0 %v1662_v0  ;;  %v27_v13 = vld [vmem:[%s2730_s0 + $0x30] sm:$0xff]  ;;  %1660 = vmatpush3.bf16.msra.mxu1 %v1662_v0  ;;  %v28_v18 = vld [vmem:[%s2730_s0 + $0x38] sm:$0xff] }
   0x4   :  { %v92_v4 = vmul.f32 %v1711_v3, %v21_v1  ;;  %v93_v5 = vmul.f32 %v1711_v3, %v22_v2  ;;  %v1718_v6 = vld [vmem:[%s2732_s2] ss:$0 sm:$0xff]  ;;  %v94_v9 = vmul.f32 %v1711_v3, %v23_v7  ;;  %v95_v10 = vmul.f32 %v1711_v3, %v24_v8  ;;  %v30_v28 = vld [vmem:[%s2730_s0 + $0x48] sm:$0xff]  ;;  %v31_v33 = vld [vmem:[%s2730_s0 + $0x50] sm:$0xff] }
   0x5   :  { %v25_v11 = vld [vmem:[%s2730_s0 + $0x20] sm:$0xff]  ;;  %v97_v17 = vmul.f32 %v1711_v3, %v26_v12  ;;  %v98_v21 = vmul.f32 %v1711_v3, %v27_v13  ;;  %v99_v22 = vmul.f32 %v1711_v3, %v28_v18  ;;  %v32_v34 = vld [vmem:[%s2730_s0 + $0x58] sm:$0xff]  ;;  %v34_v40 = vld [vmem:[%s2730_s0 + $0x68] sm:$0xff]  ;;  %v101_v43 = vmul.f32 %v1711_v3, %v30_v28 }
   0x6   :  { %v163_v14 = vadd.f32 %v1718_v6, %v92_v4  ;;  %v164_v15 = vadd.f32 %v1718_v6, %v93_v5  ;;  %v96_v16 = vmul.f32 %v1711_v3, %v25_v11  ;;  %v165_v19 = vadd.f32 %v1718_v6, %v94_v9  ;;  %v29_v23 = vld [vmem:[%s2730_s0 + $0x40] sm:$0xff]  ;;  %v35_v48 = vld [vmem:[%s2730_s0 + $0x70] sm:$0xff]  ;;  %v36_v53 = vld [vmem:[%s2730_s0 + $0x78] sm:$0xff] }
   0x7   :  { %v166_v20 = vadd.f32 %v1718_v6, %v95_v10  ;;  %v168_v27 = vadd.f32 %v1718_v6, %v97_v17  ;;  %v169_v31 = vadd.f32 %v1718_v6, %v98_v21  ;;  %v170_v32 = vadd.f32 %v1718_v6, %v99_v22  ;;  %v33_v39 = vld [vmem:[%s2730_s0 + $0x60] sm:$0xff]  ;;  %v38_v61 = vld [vmem:[%s2730_s0 + $0x88] sm:$0xff]  ;;  %v39_v0 = vld [vmem:[%s2730_s0 + $0x90] sm:$0xff] }
   0x8   :  { %v227_v24 = vmax.f32 %v163_v14, 0.0  ;;  %v228_v25 = vmax.f32 %v164_v15, 0.0  ;;  %v167_v26 = vadd.f32 %v1718_v6, %v96_v16  ;;  %v229_v29 = vmax.f32 %v165_v19, 0.0  ;;  %v37_v57 = vld [vmem:[%s2730_s0 + $0x80] sm:$0xff]  ;;  %v40_v1 = vld [vmem:[%s2730_s0 + $0x98] sm:$0xff]  ;;  %v42_v7 = vld [vmem:[%s2730_s0 + $0xa8] sm:$0xff] }
   0x9   :  { %v230_v30 = vmax.f32 %v166_v20, 0.0  ;;  %v232_v37 = vmax.f32 %v168_v27, 0.0  ;;  %v100_v38 = vmul.f32 %v1711_v3, %v29_v23  ;;  %v233_v42 = vmax.f32 %v169_v31, 0.0  ;;  %v41_v5 = vld [vmem:[%s2730_s0 + $0xa0] sm:$0xff]  ;;  %v43_v16 = vld [vmem:[%s2730_s0 + $0xb0] sm:$0xff]  ;;  %v44_v21 = vld [vmem:[%s2730_s0 + $0xb8] sm:$0xff] }
   0xa   :  { %v291_v35 = vpack.c.bf16 %v228_v25, %v227_v24  ;;  %v231_v36 = vmax.f32 %v167_v26, 0.0  ;;  %v102_v46 = vmul.f32 %v1711_v3, %v31_v33  ;;  %v103_v47 = vmul.f32 %v1711_v3, %v32_v34  ;;  %v45_v22 = vld [vmem:[%s2730_s0 + $0xc0] sm:$0xff] }
   0xb   :  { %v292_v41 = vpack.c.bf16 %v230_v30, %v229_v29  ;;  %v171_v45 = vadd.f32 %v1718_v6, %v100_v38  ;;  %v234_v49 = vmax.f32 %v170_v32, 0.0  ;;  %v172_v50 = vadd.f32 %v1718_v6, %v101_v43  ;;  %v46_v30 = vld [vmem:[%s2730_s0 + $0xc8] sm:$0xff]  ;;  %v48_v38 = vld [vmem:[%s2730_s0 + $0xd8] sm:$0xff] }
   0xc   :  { %1595 = vmatprep.mubr.msk.bf16.mxu0 %vm331_vm0, %v291_v35  ;;  %v293_v44 = vpack.c.bf16 %v232_v37, %v231_v36  ;;  %v104_v51 = vmul.f32 %v1711_v3, %v33_v39  ;;  %v105_v52 = vmul.f32 %v1711_v3, %v34_v40  ;;  %v173_v55 = vadd.f32 %v1718_v6, %v102_v46  ;;  %v47_v37 = vld [vmem:[%s2730_s0 + $0xd0] sm:$0xff] }
   0xd   :  { %1596 = vmatmul.mubr.msk.bf16.vlgmr.msra.gmra.mxu0 %vm331_vm0, %v292_v41  ;;  %v235_v54 = vmax.f32 %v171_v45, 0.0  ;;  %v174_v56 = vadd.f32 %v1718_v6, %v103_v47  ;;  %v236_v58 = vmax.f32 %v172_v50, 0.0  ;;  %v106_v60 = vmul.f32 %v1711_v3, %v35_v48  ;;  %v49_v47 = vld [vmem:[%s2730_s0 + $0xe0] sm:$0xff]  ;;  %v50_v48 = vld [vmem:[%s2730_s0 + $0xe8] sm:$0xff] }
   0xe   :  { %1599 = vmatprep.mubr.msk.bf16.mxu0 %vm331_vm0, %v293_v44  ;;  %v175_v59 = vadd.f32 %v1718_v6, %v104_v51  ;;  %v176_v62 = vadd.f32 %v1718_v6, %v105_v52  ;;  %v107_v63 = vmul.f32 %v1711_v3, %v36_v53  ;;  %v294_v2 = vpack.c.bf16 %v234_v49, %v233_v42  ;;  %v53_v53 = vld [vmem:[%s2730_s0 + $0x100] sm:$0xff] }
   0xf   :  { %v108_v4 = vmul.f32 %v1711_v3, %v37_v57  ;;  %v295_v8 = vpack.c.bf16 %v236_v58, %v235_v54  ;;  %v237_v9 = vmax.f32 %v173_v55, 0.0  ;;  %v238_v10 = vmax.f32 %v174_v56, 0.0 }
  0x10   :  { %v109_v11 = vmul.f32 %v1711_v3, %v38_v61  ;;  %v239_v12 = vmax.f32 %v175_v59, 0.0  ;;  %v177_v13 = vadd.f32 %v1718_v6, %v106_v60  ;;  %v110_v14 = vmul.f32 %v1711_v3, %v39_v0  ;;  %v51_v59 = vld [vmem:[%s2730_s0 + $0xf0] sm:$0xff]  ;;  %v54_v60 = vld [vmem:[%s2730_s0 + $0x108] sm:$0xff] }
  0x11   :  { %v111_v15 = vmul.f32 %v1711_v3, %v40_v1  ;;  %v240_v17 = vmax.f32 %v176_v62, 0.0  ;;  %v178_v18 = vadd.f32 %v1718_v6, %v107_v63  ;;  %v112_v19 = vmul.f32 %v1711_v3, %v41_v5  ;;  %v55_v1 = vld [vmem:[%s2730_s0 + $0x110] sm:$0xff] }
  0x12   :  { %v113_v20 = vmul.f32 %v1711_v3, %v42_v7  ;;  %v179_v23 = vadd.f32 %v1718_v6, %v108_v4  ;;  %v180_v24 = vadd.f32 %v1718_v6, %v109_v11  ;;  %v181_v25 = vadd.f32 %v1718_v6, %v110_v14 }
  0x13   :  { %v182_v26 = vadd.f32 %v1718_v6, %v111_v15  ;;  %v183_v27 = vadd.f32 %v1718_v6, %v112_v19  ;;  %v114_v29 = vmul.f32 %v1711_v3, %v43_v16  ;;  %v115_v31 = vmul.f32 %v1711_v3, %v44_v21  ;;  %v59_v16 = vld [vmem:[%s2730_s0 + $0x130] sm:$0xff]  ;;  %v60_v21 = vld [vmem:[%s2730_s0 + $0x138] sm:$0xff] }
  0x14   :  { %v184_v28 = vadd.f32 %v1718_v6, %v113_v20  ;;  %v116_v32 = vmul.f32 %v1711_v3, %v45_v22  ;;  %v296_v33 = vpack.c.bf16 %v238_v10, %v237_v9  ;;  %v297_v34 = vpack.c.bf16 %v240_v17, %v239_v12  ;;  %v57_v9 = vld [vmem:[%s2730_s0 + $0x120] sm:$0xff]  ;;  %v58_v10 = vld [vmem:[%s2730_s0 + $0x128] sm:$0xff]  ;;  %v52_v12 = vld [vmem:[%s2730_s0 + $0xf8] sm:$0xff] }
  0x15   :  { %1600 = vmatmul.mubr.msk.bf16.gmra.mxu0 %vm331_vm0, %v294_v2  ;;  %v241_v35 = vmax.f32 %v177_v13, 0.0  ;;  %v242_v36 = vmax.f32 %v178_v18, 0.0  ;;  %v243_v39 = vmax.f32 %v179_v23, 0.0  ;;  %v244_v40 = vmax.f32 %v180_v24, 0.0  ;;  %v56_v2 = vld [vmem:[%s2730_s0 + $0x118] sm:$0xff] }
  0x16   :  { %1603 = vmatprep.mubr.msk.bf16.mxu0 %vm331_vm0, %v295_v8  ;;  %v245_v41 = vmax.f32 %v181_v25, 0.0  ;;  %v117_v42 = vmul.f32 %v1711_v3, %v46_v30  ;;  %v246_v43 = vmax.f32 %v182_v26, 0.0  ;;  %v247_v44 = vmax.f32 %v183_v27, 0.0  ;;  %v61_v26 = vld [vmem:[%s2730_s0 + $0x140] sm:$0xff] }
  0x17   :  { %v248_v45 = vmax.f32 %v184_v28, 0.0  ;;  %v1850_v46 = vadd.f32 %v1718_v6, %v114_v29  ;;  %v1859_v49 = vadd.f32 %v1718_v6, %v115_v31  ;;  %v1862_v50 = vadd.f32 %v1718_v6, %v116_v32 }
  0x18   :  { %v118_v51 = vmul.f32 %v1711_v3, %v47_v37  ;;  %v119_v52 = vmul.f32 %v1711_v3, %v48_v38  ;;  %v1870_v54 = vadd.f32 %v1718_v6, %v117_v42  ;;  %v298_v55 = vpack.c.bf16 %v242_v36, %v241_v35  ;;  %v62_v35 = vld [vmem:[%s2730_s0 + $0x148] sm:$0xff] }
  0x19   :  { %v299_v56 = vpack.c.bf16 %v244_v40, %v243_v39  ;;  %v120_v57 = vmul.f32 %v1711_v3, %v49_v47  ;;  %v121_v58 = vmul.f32 %v1711_v3, %v50_v48  ;;  %v1882_v61 = vpack.c.bf16 %v246_v43, %v245_v41  ;;  %v63_v40 = vld [vmem:[%s2730_s0 + $0x150] sm:$0xff]  ;;  %v64_v41 = vld [vmem:[%s2730_s0 + $0x158] sm:$0xff]  ;;  %v65_v47 = vld [vmem:[%s2730_s0 + $0x160] sm:$0xff] }
  0x1a   :  { %v1884_v62 = vpack.c.bf16 %v248_v45, %v247_v44  ;;  %v249_v63 = vmax.f32 %v1850_v46, 0.0  ;;  %v124_v0 = vmul.f32 %v1711_v3, %v53_v53  ;;  %v250_v4 = vmax.f32 %v1859_v49, 0.0  ;;  %v66_v48 = vld [vmem:[%s2730_s0 + $0x168] sm:$0xff] }
  0x1b   :  { %v251_v5 = vmax.f32 %v1862_v50, 0.0  ;;  %v1897_v7 = vadd.f32 %v1718_v6, %v118_v51  ;;  %v1900_v8 = vadd.f32 %v1718_v6, %v119_v52  ;;  %v252_v11 = vmax.f32 %v1870_v54, 0.0  ;;  %v77_v50 = vld [vmem:[%s2730_s0 + $0x1c0] sm:$0xff] }
  0x1c   :  { %v1913_v13 = vmul.f32 %v1711_v3, %v51_v59  ;;  %v125_v14 = vmul.f32 %v1711_v3, %v54_v60  ;;  %v195_v15 = vadd.f32 %v1718_v6, %v124_v0  ;;  %v1921_v17 = vadd.f32 %v1718_v6, %v120_v57  ;;  %v68_v0 = vld [vmem:[%s2730_s0 + $0x178] sm:$0xff] }
  0x1d   :  { %1604 = vmatmul.mubr.msk.bf16.gmra.mxu0 %vm331_vm0, %v296_v33  ;;  %v1924_v18 = vadd.f32 %v1718_v6, %v121_v58  ;;  %v126_v19 = vmul.f32 %v1711_v3, %v55_v1  ;;  %v127_v20 = vmul.f32 %v1711_v3, %v56_v2  ;;  %v128_v24 = vmul.f32 %v1711_v3, %v57_v9 }
  0x1e   :  { %1607 = vmatprep.mubr.msk.bf16.mxu0 %vm331_vm0, %v297_v34  ;;  %v196_v22 = vadd.f32 %v1718_v6, %v125_v14  ;;  %v259_v23 = vmax.f32 %v195_v15, 0.0  ;;  %v129_v25 = vmul.f32 %v1711_v3, %v58_v10  ;;  %v1938_v27 = vmul.f32 %v1711_v3, %v52_v12  ;;  %v69_v10 = vld [vmem:[%s2730_s0 + $0x180] sm:$0xff] }
  0x1f   :  { %v197_v28 = vadd.f32 %v1718_v6, %v126_v19  ;;  %v198_v29 = vadd.f32 %v1718_v6, %v127_v20  ;;  %v130_v30 = vmul.f32 %v1711_v3, %v59_v16  ;;  %v199_v32 = vadd.f32 %v1718_v6, %v128_v24 }
  0x20   :  { %v260_v31 = vmax.f32 %v196_v22, 0.0  ;;  %v200_v33 = vadd.f32 %v1718_v6, %v129_v25  ;;  %v131_v34 = vmul.f32 %v1711_v3, %v60_v21  ;;  %v132_v39 = vmul.f32 %v1711_v3, %v61_v26 }
  0x21   :  { %v261_v36 = vmax.f32 %v197_v28, 0.0  ;;  %v262_v37 = vmax.f32 %v198_v29, 0.0  ;;  %v201_v38 = vadd.f32 %v1718_v6, %v130_v30  ;;  %v263_v43 = vmax.f32 %v199_v32, 0.0 }
  0x22   :  { %v307_v42 = vpack.c.bf16 %v260_v31, %v259_v23  ;;  %v264_v44 = vmax.f32 %v200_v33, 0.0  ;;  %v202_v45 = vadd.f32 %v1718_v6, %v131_v34  ;;  %v253_v51 = vmax.f32 %v1897_v7, 0.0 }
  0x23   :  { %v308_v52 = vpack.c.bf16 %v262_v37, %v261_v36  ;;  %v133_v53 = vmul.f32 %v1711_v3, %v62_v35  ;;  %v265_v58 = vmax.f32 %v201_v38, 0.0  ;;  %v134_v59 = vmul.f32 %v1711_v3, %v63_v40  ;;  %v73_v40 = vld [vmem:[%s2730_s0 + $0x1a0] sm:$0xff] }
  0x24   :  { %1627 = vmatprep.mubr.msk.bf16.mxu1 %vm331_vm0, %v307_v42  ;;  %v309_v57 = vpack.c.bf16 %v264_v44, %v263_v43  ;;  %v135_v60 = vmul.f32 %v1711_v3, %v64_v41  ;;  %v266_v1 = vmax.f32 %v202_v45, 0.0  ;;  %v136_v7 = vmul.f32 %v1711_v3, %v65_v47  ;;  %v78_v42 = vld [vmem:[%s2730_s0 + $0x1c8] sm:$0xff] }
  0x25   :  { %1608 = vmatmul.mubr.msk.bf16.gmra.mxu0 %vm331_vm0, %v298_v55  ;;  %v203_v55 = vadd.f32 %v1718_v6, %v132_v39  ;;  %1628 = vmatmul.mubr.msk.bf16.vlgmr.msra.gmra.mxu1 %vm331_vm0, %v308_v52  ;;  %v204_v2 = vadd.f32 %v1718_v6, %v133_v53  ;;  %v137_v9 = vmul.f32 %v1711_v3, %v66_v48  ;;  %v254_v23 = vmax.f32 %v1900_v8, 0.0  ;;  %v70_v8 = vld [vmem:[%s2730_s0 + $0x188] sm:$0xff]  ;;  %v80_v52 = vld [vmem:[%s2730_s0 + $0x1d8] sm:$0xff] }
  0x26   :  { %1611 = vmatprep.mubr.msk.bf16.mxu0 %vm331_vm0, %v299_v56  ;;  %v67_v56 = vld [vmem:[%s2730_s0 + $0x170] sm:$0xff]  ;;  %1631 = vmatprep.mubr.msk.bf16.mxu1 %vm331_vm0, %v309_v57  ;;  %v205_v14 = vadd.f32 %v1718_v6, %v134_v59  ;;  %v206_v15 = vadd.f32 %v1718_v6, %v135_v60  ;;  %v207_v20 = vadd.f32 %v1718_v6, %v136_v7  ;;  %v255_v24 = vmax.f32 %v1921_v17, 0.0  ;;  %v74_v45 = vld [vmem:[%s2730_s0 + $0x1a8] sm:$0xff] }
  0x27   :  { %v267_v12 = vmax.f32 %v203_v55, 0.0  ;;  %v138_v16 = vmul.f32 %v1711_v3, %v67_v56  ;;  %v268_v19 = vmax.f32 %v204_v2, 0.0  ;;  %v208_v21 = vadd.f32 %v1718_v6, %v137_v9  ;;  %v82_v59 = vld [vmem:[%s2730_s0 + $0x1e8] sm:$0xff]  ;;  %v83_v7 = vld [vmem:[%s2730_s0 + $0x1f0] sm:$0xff] }
  0x28   :  { %v139_v22 = vmul.f32 %v1711_v3, %v68_v0  ;;  %v1996_v25 = vadd.f32 %v1718_v6, %v1913_v13  ;;  %v140_v26 = vmul.f32 %v1711_v3, %v69_v10  ;;  %v256_v28 = vmax.f32 %v1924_v18, 0.0 }
  0x29   :  { %v310_v29 = vpack.c.bf16 %v266_v1, %v265_v58  ;;  %v269_v30 = vmax.f32 %v205_v14, 0.0  ;;  %v270_v31 = vmax.f32 %v206_v15, 0.0  ;;  %v311_v17 = vpack.c.bf16 %v268_v19, %v267_v12  ;;  %v81_v58 = vld [vmem:[%s2730_s0 + $0x1e0] sm:$0xff]  ;;  %v84_v15 = vld [vmem:[%s2730_s0 + $0x1f8] sm:$0xff] }
  0x2a   :  { %v271_v13 = vmax.f32 %v207_v20, 0.0  ;;  %v272_v32 = vmax.f32 %v208_v21, 0.0  ;;  %v2008_v33 = vadd.f32 %v1718_v6, %v138_v16  ;;  %v302_v18 = vpack.c.bf16 %v250_v4, %v249_v63  ;;  %v71_v63 = vld [vmem:[%s2730_s0 + $0x190] sm:$0xff] }
  0x2b   :  { %v2018_v34 = vadd.f32 %v1718_v6, %v139_v22  ;;  %v303_v35 = vpack.c.bf16 %v252_v11, %v251_v5  ;;  %v2029_v36 = vadd.f32 %v1718_v6, %v1938_v27  ;;  %v141_v46 = vmul.f32 %v1711_v3, %v70_v8  ;;  %v72_v11 = vld [vmem:[%s2730_s0 + $0x198] sm:$0xff] }
  0x2c   :  { %v2033_v49 = vadd.f32 %v1718_v6, %v140_v26  ;;  %v2041_v4 = vpack.c.bf16 %v254_v23, %v253_v51  ;;  %v2043_v54 = vpack.c.bf16 %v256_v28, %v255_v24  ;;  %v257_v5 = vmax.f32 %v1996_v25, 0.0  ;;  %v79_v51 = vld [vmem:[%s2730_s0 + $0x1d0] sm:$0xff] }
  0x2d   :  { %1612 = vmatmul.mubr.msk.bf16.gmra.mxu0 %vm331_vm0, %v1882_v61  ;;  %v75_v61 = vld [vmem:[%s2730_s0 + $0x1b0] sm:$0xff]  ;;  %1632 = vmatmul.mubr.msk.bf16.gmra.mxu1 %vm331_vm0, %v310_v29  ;;  %v312_v37 = vpack.c.bf16 %v270_v31, %v269_v30  ;;  %v313_v38 = vpack.c.bf16 %v272_v32, %v271_v13  ;;  %v273_v39 = vmax.f32 %v2008_v33, 0.0  ;;  %v274_v43 = vmax.f32 %v2018_v34, 0.0 }
  0x2e   :  { %1615 = vmatprep.mubr.msk.bf16.mxu0 %vm331_vm0, %v1884_v62  ;;  %v76_v62 = vld [vmem:[%s2730_s0 + $0x1b8] sm:$0xff]  ;;  %v146_v27 = vmul.f32 %v1711_v3, %v75_v61  ;;  %1635 = vmatprep.mubr.msk.bf16.mxu1 %vm331_vm0, %v311_v17  ;;  %v142_v44 = vmul.f32 %v1711_v3, %v71_v63  ;;  %v148_v48 = vmul.f32 %v1711_v3, %v77_v50  ;;  %v275_v55 = vmax.f32 %v2033_v49, 0.0 }
  0x2f   :  { %v147_v41 = vmul.f32 %v1711_v3, %v76_v62  ;;  %v212_v53 = vadd.f32 %v1718_v6, %v141_v46  ;;  %v143_v56 = vmul.f32 %v1711_v3, %v72_v11  ;;  %v144_v60 = vmul.f32 %v1711_v3, %v73_v40 }
  0x30   :  { %v217_v47 = vadd.f32 %v1718_v6, %v146_v27  ;;  %v149_v1 = vmul.f32 %v1711_v3, %v78_v42  ;;  %v219_v2 = vadd.f32 %v1718_v6, %v148_v48  ;;  %v145_v9 = vmul.f32 %v1711_v3, %v74_v45 }
  0x31   :  { %v218_v57 = vadd.f32 %v1718_v6, %v147_v41  ;;  %v150_v12 = vmul.f32 %v1711_v3, %v79_v51  ;;  %v151_v14 = vmul.f32 %v1711_v3, %v80_v52  ;;  %v152_v20 = vmul.f32 %v1711_v3, %v81_v58 }
  0x32   :  { %v281_v0 = vmax.f32 %v217_v47, 0.0  ;;  %v220_v16 = vadd.f32 %v1718_v6, %v149_v1  ;;  %v283_v19 = vmax.f32 %v219_v2, 0.0  ;;  %v153_v21 = vmul.f32 %v1711_v3, %v82_v59 }
  0x33   :  { %v282_v10 = vmax.f32 %v218_v57, 0.0  ;;  %v221_v23 = vadd.f32 %v1718_v6, %v150_v12  ;;  %v222_v24 = vadd.f32 %v1718_v6, %v151_v14  ;;  %v154_v26 = vmul.f32 %v1711_v3, %v83_v7 }
  0x34   :  { %v284_v28 = vmax.f32 %v220_v16, 0.0  ;;  %v223_v29 = vadd.f32 %v1718_v6, %v152_v20  ;;  %v224_v30 = vadd.f32 %v1718_v6, %v153_v21  ;;  %v155_v31 = vmul.f32 %v1711_v3, %v84_v15 }
  0x35   :  { %1616 = vmatmul.mubr.msk.bf16.gmra.mxu0 %vm331_vm0, %v302_v18  ;;  %v318_v22 = vpack.c.bf16 %v282_v10, %v281_v0  ;;  %1636 = vmatmul.mubr.msk.bf16.gmra.mxu1 %vm331_vm0, %v312_v37  ;;  %v276_v8 = vmax.f32 %v212_v53, 0.0  ;;  %v285_v17 = vmax.f32 %v221_v23, 0.0  ;;  %v286_v13 = vmax.f32 %v222_v24, 0.0 }
  0x36   :  { %1619 = vmatprep.mubr.msk.bf16.mxu0 %vm331_vm0, %v303_v35  ;;  %1639 = vmatprep.mubr.msk.bf16.mxu1 %vm331_vm0, %v313_v38  ;;  %v225_v32 = vadd.f32 %v1718_v6, %v154_v26  ;;  %v319_v33 = vpack.c.bf16 %v284_v28, %v283_v19  ;;  %v287_v61 = vmax.f32 %v223_v29, 0.0  ;;  %v288_v18 = vmax.f32 %v224_v30, 0.0 }
  0x37   :  { %v226_v34 = vadd.f32 %v1718_v6, %v155_v31  ;;  %v258_v62 = vmax.f32 %v2029_v36, 0.0  ;;  %v314_v35 = vpack.c.bf16 %v274_v43, %v273_v39  ;;  %v320_v46 = vpack.c.bf16 %v286_v13, %v285_v17 }
  0x38   :  { %v289_v49 = vmax.f32 %v225_v32, 0.0  ;;  %v213_v3 = vadd.f32 %v1718_v6, %v142_v44  ;;  %v214_v63 = vadd.f32 %v1718_v6, %v143_v56  ;;  %v321_v50 = vpack.c.bf16 %v288_v18, %v287_v61 }
  0x39   :  { %v290_v11 = vmax.f32 %v226_v34, 0.0  ;;  %v315_v27 = vpack.c.bf16 %v276_v8, %v275_v55  ;;  %v215_v37 = vadd.f32 %v1718_v6, %v144_v60  ;;  %v216_v36 = vadd.f32 %v1718_v6, %v145_v9 }
  0x3a   :  { %v306_v39 = vpack.c.bf16 %v258_v62, %v257_v5  ;;  %v278_v40 = vmax.f32 %v214_v63, 0.0  ;;  %v1663_v25 = vmov 0.0  }
  0x3b   :  { %v322_v38 = vpack.c.bf16 %v290_v11, %v289_v49  ;;  %v279_v41 = vmax.f32 %v215_v37, 0.0  ;;  %v280_v42 = vmax.f32 %v216_v36, 0.0  ;;  %1174 = vst.msk [vmem:[%s2734_s5] sm:$0x1] %vm1173_vm2, %v1663_v25  ;;  %1175 = vst.msk [vmem:[%s2735_s6] sm:$0x1] %vm1173_vm2, %v1663_v25 }
  0x3d   :  { %1620 = vmatmul.mubr.msk.bf16.gmra.mxu0 %vm331_vm0, %v2041_v4  ;;  %1640 = vmatmul.mubr.msk.bf16.gmra.mxu1 %vm331_vm0, %v314_v35  ;;  %v277_v4 = vmax.f32 %v213_v3, 0.0  ;;  %v317_v43 = vpack.c.bf16 %v280_v42, %v279_v41 }
  0x3e   :  { %1623 = vmatprep.mubr.msk.bf16.mxu0 %vm331_vm0, %v2043_v54  ;;  %1643 = vmatprep.mubr.msk.bf16.mxu1 %vm331_vm0, %v315_v27 }
  0x3f   :  { %v316_v54 = vpack.c.bf16 %v278_v40, %v277_v4 }
  0x45   :  { %1624 = vmatmul.mubr.msk.bf16.gmra.mxu0 %vm331_vm0, %v306_v39  ;;  %1644 = vmatmul.mubr.msk.bf16.gmra.mxu1 %vm331_vm0, %v316_v54 }
  0x46   :  { %1647 = vmatprep.mubr.msk.bf16.mxu1 %vm331_vm0, %v317_v43 }
  0x4d   :  { %1648 = vmatmul.mubr.msk.bf16.gmra.mxu1 %vm331_vm0, %v318_v22 }
  0x4e   :  { %1651 = vmatprep.mubr.msk.bf16.mxu1 %vm331_vm0, %v319_v33 }
  0x55   :  { %1652 = vmatmul.mubr.msk.bf16.gmra.mxu1 %vm331_vm0, %v320_v46 }
  0x56   :  { %1655 = vmatprep.mubr.msk.bf16.mxu1 %vm331_vm0, %v321_v50 }
  0x5d   :  { %1656 = vmatmul.mubr.msk.bf16.gmra.mxu1 %vm331_vm0, %v322_v38 }
  0xcd   :  { %v1597_v6 = vpop.f32.mrf.mxu0 }
  0xce   :  { %720 = vst.msk [vmem:[%s2733_s4 + $0x10] sm:$0xff] %vm717_vm1, %v1597_v6  ;;  %v1316_v48 = vmul.f32 %v1597_v6, %v1597_v6  ;;  %v1180_v57 = vsel %vm717_vm1, %v1597_v6, 0.0 }
  0xcf   :  { %v462_v5 = vpop.f32.mrf.mxu0 }
  0xd0   :  { %718 = vst.msk [vmem:[%s2733_s4] sm:$0xff] %vm717_vm1, %v462_v5  ;;  %v1314_v45 = vmul.f32 %v462_v5, %v462_v5  ;;  %v1177_v51 = vsel %vm717_vm1, %v462_v5, 0.0  ;;  %v1381_v7 = vsel %vm717_vm1, %v1316_v48, 0.0 }
  0xd1   :  { %v1598_v44 = vpop.f32.mrf.mxu0 }
  0xd2   :  { %721 = vst.msk [vmem:[%s2733_s4 + $0x18] sm:$0xff] %vm717_vm1, %v1598_v44  ;;  %v1378_v58 = vsel %vm717_vm1, %v1314_v45, 0.0  ;;  %v1317_v59 = vmul.f32 %v1598_v44, %v1598_v44  ;;  %v1182_v9 = vsel %vm717_vm1, %v1598_v44, 0.0 }
  0xd3   :  { %v465_v47 = vpop.f32.mrf.mxu0 }
  0xd4   :  { %719 = vst.msk [vmem:[%s2733_s4 + $0x8] sm:$0xff] %vm717_vm1, %v465_v47  ;;  %v1178_v52 = vsel %vm717_vm1, %v465_v47, 0.0  ;;  %v1315_v53 = vmul.f32 %v465_v47, %v465_v47  ;;  %v1383_v16 = vsel %vm717_vm1, %v1317_v59, 0.0 }
  0xd5   :  { %v1179_v55 = vadd.f32 %v1178_v52, %v1177_v51  ;;  %v1601_v56 = vpop.f32.mrf.mxu0 }
  0xd6   :  { %v1379_v60 = vsel %vm717_vm1, %v1315_v53, 0.0  ;;  %724 = vst.msk [vmem:[%s2733_s4 + $0x30] sm:$0xff] %vm717_vm1, %v1601_v56  ;;  %v1320_v23 = vmul.f32 %v1601_v56, %v1601_v56  ;;  %v1188_v8 = vsel %vm717_vm1, %v1601_v56, 0.0 }
  0xd7   :  { %v1181_v0 = vadd.f32 %v1180_v57, %v1179_v55  ;;  %v1380_v1 = vadd.f32 %v1379_v60, %v1378_v58  ;;  %v478_v2 = vpop.f32.mrf.mxu0 }
  0xd8   :  { %722 = vst.msk [vmem:[%s2733_s4 + $0x20] sm:$0xff] %vm717_vm1, %v478_v2  ;;  %v1318_v10 = vmul.f32 %v478_v2, %v478_v2  ;;  %v1184_v19 = vsel %vm717_vm1, %v478_v2, 0.0  ;;  %v1389_v18 = vsel %vm717_vm1, %v1320_v23, 0.0 }
  0xd9   :  { %v1382_v12 = vadd.f32 %v1381_v7, %v1380_v1  ;;  %v1183_v14 = vadd.f32 %v1182_v9, %v1181_v0  ;;  %v1602_v15 = vpop.f32.mrf.mxu0 }
  0xda   :  { %725 = vst.msk [vmem:[%s2733_s4 + $0x38] sm:$0xff] %vm717_vm1, %v1602_v15  ;;  %v1385_v24 = vsel %vm717_vm1, %v1318_v10, 0.0  ;;  %v1321_v17 = vmul.f32 %v1602_v15, %v1602_v15  ;;  %v1190_v34 = vsel %vm717_vm1, %v1602_v15, 0.0 }
  0xdb   :  { %v1185_v20 = vadd.f32 %v1184_v19, %v1183_v14  ;;  %v1384_v21 = vadd.f32 %v1383_v16, %v1382_v12  ;;  %v481_v22 = vpop.f32.mrf.mxu0 }
  0xdc   :  { %723 = vst.msk [vmem:[%s2733_s4 + $0x28] sm:$0xff] %vm717_vm1, %v481_v22  ;;  %v1186_v26 = vsel %vm717_vm1, %v481_v22, 0.0  ;;  %v1319_v28 = vmul.f32 %v481_v22, %v481_v22  ;;  %v1391_v3 = vsel %vm717_vm1, %v1321_v17, 0.0 }
  0xdd   :  { %v1386_v29 = vadd.f32 %v1385_v24, %v1384_v21  ;;  %v1187_v30 = vadd.f32 %v1186_v26, %v1185_v20  ;;  %v1605_v31 = vpop.f32.mrf.mxu0 }
  0xde   :  { %v1387_v13 = vsel %vm717_vm1, %v1319_v28, 0.0  ;;  %728 = vst.msk [vmem:[%s2733_s4 + $0x50] sm:$0xff] %vm717_vm1, %v1605_v31  ;;  %v1324_v37 = vmul.f32 %v1605_v31, %v1605_v31  ;;  %v1196_v42 = vsel %vm717_vm1, %v1605_v31, 0.0 }
  0xdf   :  { %v1189_v32 = vadd.f32 %v1188_v8, %v1187_v30  ;;  %v1388_v33 = vadd.f32 %v1387_v13, %v1386_v29  ;;  %v494_v61 = vpop.f32.mrf.mxu0 }
  0xe0   :  { %726 = vst.msk [vmem:[%s2733_s4 + $0x40] sm:$0xff] %vm717_vm1, %v494_v61  ;;  %v1322_v62 = vmul.f32 %v494_v61, %v494_v61  ;;  %v1192_v63 = vsel %vm717_vm1, %v494_v61, 0.0  ;;  %v1397_v44 = vsel %vm717_vm1, %v1324_v37, 0.0 }
  0xe1   :  { %v1390_v35 = vadd.f32 %v1389_v18, %v1388_v33  ;;  %v1191_v46 = vadd.f32 %v1190_v34, %v1189_v32  ;;  %v1606_v49 = vpop.f32.mrf.mxu0 }
  0xe2   :  { %729 = vst.msk [vmem:[%s2733_s4 + $0x58] sm:$0xff] %vm717_vm1, %v1606_v49  ;;  %v1393_v36 = vsel %vm717_vm1, %v1322_v62, 0.0  ;;  %v1325_v54 = vmul.f32 %v1606_v49, %v1606_v49  ;;  %v1198_v45 = vsel %vm717_vm1, %v1606_v49, 0.0 }
  0xe3   :  { %v1193_v50 = vadd.f32 %v1192_v63, %v1191_v46  ;;  %v1392_v11 = vadd.f32 %v1391_v3, %v1390_v35  ;;  %v497_v27 = vpop.f32.mrf.mxu0 }
  0xe4   :  { %727 = vst.msk [vmem:[%s2733_s4 + $0x48] sm:$0xff] %vm717_vm1, %v497_v27  ;;  %v1194_v38 = vsel %vm717_vm1, %v497_v27, 0.0  ;;  %v1323_v39 = vmul.f32 %v497_v27, %v497_v27  ;;  %v1399_v55 = vsel %vm717_vm1, %v1325_v54, 0.0 }
  0xe5   :  { %v1394_v4 = vadd.f32 %v1393_v36, %v1392_v11  ;;  %v1195_v40 = vadd.f32 %v1194_v38, %v1193_v50  ;;  %v1609_v41 = vpop.f32.mrf.mxu0  ;;  %v2218_v53 = vpop.f32.mrf.mxu1 }
  0xe6   :  { %v1395_v43 = vsel %vm717_vm1, %v1323_v39, 0.0  ;;  %732 = vst.msk [vmem:[%s2733_s4 + $0x70] sm:$0xff] %vm717_vm1, %v1609_v41  ;;  %752 = vst.msk [vmem:[%s2733_s4 + $0x110] sm:$0xff] %vm717_vm1, %v2218_v53  ;;  %v1328_v0 = vmul.f32 %v1609_v41, %v1609_v41  ;;  %v1204_v15 = vsel %vm717_vm1, %v1609_v41, 0.0 }
  0xe7   :  { %v1197_v6 = vadd.f32 %v1196_v42, %v1195_v40  ;;  %v1396_v25 = vadd.f32 %v1395_v43, %v1394_v4  ;;  %v510_v5 = vpop.f32.mrf.mxu0  ;;  %v2231_v60 = vpop.f32.mrf.mxu1 }
  0xe8   :  { %730 = vst.msk [vmem:[%s2733_s4 + $0x60] sm:$0xff] %vm717_vm1, %v510_v5  ;;  %v1326_v47 = vmul.f32 %v510_v5, %v510_v5  ;;  %v1200_v56 = vsel %vm717_vm1, %v510_v5, 0.0  ;;  %750 = vst.msk [vmem:[%s2733_s4 + $0x100] sm:$0xff] %vm717_vm1, %v2231_v60  ;;  %v1405_v24 = vsel %vm717_vm1, %v1328_v0, 0.0 }
  0xe9   :  { %v1398_v48 = vadd.f32 %v1397_v44, %v1396_v25  ;;  %v1199_v51 = vadd.f32 %v1198_v45, %v1197_v6  ;;  %v1610_v52 = vpop.f32.mrf.mxu0  ;;  %v2244_v14 = vpop.f32.mrf.mxu1 }
  0xea   :  { %733 = vst.msk [vmem:[%s2733_s4 + $0x78] sm:$0xff] %vm717_vm1, %v1610_v52  ;;  %v1401_v1 = vsel %vm717_vm1, %v1326_v47, 0.0  ;;  %v1329_v16 = vmul.f32 %v1610_v52, %v1610_v52  ;;  %753 = vst.msk [vmem:[%s2733_s4 + $0x118] sm:$0xff] %vm717_vm1, %v2244_v14  ;;  %v1206_v26 = vsel %vm717_vm1, %v1610_v52, 0.0 }
  0xeb   :  { %v1201_v57 = vadd.f32 %v1200_v56, %v1199_v51  ;;  %v1400_v58 = vadd.f32 %v1399_v55, %v1398_v48  ;;  %v513_v59 = vpop.f32.mrf.mxu0  ;;  %v2257_v23 = vpop.f32.mrf.mxu1 }
  0xec   :  { %731 = vst.msk [vmem:[%s2733_s4 + $0x68] sm:$0xff] %vm717_vm1, %v513_v59  ;;  %v1202_v2 = vsel %vm717_vm1, %v513_v59, 0.0  ;;  %v1327_v7 = vmul.f32 %v513_v59, %v513_v59  ;;  %751 = vst.msk [vmem:[%s2733_s4 + $0x108] sm:$0xff] %vm717_vm1, %v2257_v23  ;;  %v1407_v17 = vsel %vm717_vm1, %v1329_v16, 0.0 }
  0xed   :  { %v1402_v9 = vadd.f32 %v1401_v1, %v1400_v58  ;;  %v1203_v10 = vadd.f32 %v1202_v2, %v1201_v57  ;;  %v1613_v12 = vpop.f32.mrf.mxu0  ;;  %v2270_v8 = vpop.f32.mrf.mxu1 }
  0xee   :  { %v1403_v19 = vsel %vm717_vm1, %v1327_v7, 0.0  ;;  %736 = vst.msk [vmem:[%s2733_s4 + $0x90] sm:$0xff] %vm717_vm1, %v1613_v12  ;;  %756 = vst.msk [vmem:[%s2733_s4 + $0x130] sm:$0xff] %vm717_vm1, %v2270_v8  ;;  %v1332_v34 = vmul.f32 %v1613_v12, %v1613_v12  ;;  %v1212_v11 = vsel %vm717_vm1, %v1613_v12, 0.0 }
  0xef   :  { %v1205_v20 = vadd.f32 %v1204_v15, %v1203_v10  ;;  %v1404_v21 = vadd.f32 %v1403_v19, %v1402_v9  ;;  %v526_v22 = vpop.f32.mrf.mxu0  ;;  %v2283_v18 = vpop.f32.mrf.mxu1 }
  0xf0   :  { %734 = vst.msk [vmem:[%s2733_s4 + $0x80] sm:$0xff] %vm717_vm1, %v526_v22  ;;  %v1330_v28 = vmul.f32 %v526_v22, %v526_v22  ;;  %v1208_v13 = vsel %vm717_vm1, %v526_v22, 0.0  ;;  %754 = vst.msk [vmem:[%s2733_s4 + $0x120] sm:$0xff] %vm717_vm1, %v2283_v18  ;;  %v1413_v40 = vsel %vm717_vm1, %v1332_v34, 0.0 }
  0xf1   :  { %v1406_v29 = vadd.f32 %v1405_v24, %v1404_v21  ;;  %v1207_v30 = vadd.f32 %v1206_v26, %v1205_v20  ;;  %v1614_v31 = vpop.f32.mrf.mxu0  ;;  %v2296_v50 = vpop.f32.mrf.mxu1 }
  0xf2   :  { %737 = vst.msk [vmem:[%s2733_s4 + $0x98] sm:$0xff] %vm717_vm1, %v1614_v31  ;;  %v1409_v62 = vsel %vm717_vm1, %v1330_v28, 0.0  ;;  %v1333_v27 = vmul.f32 %v1614_v31, %v1614_v31  ;;  %757 = vst.msk [vmem:[%s2733_s4 + $0x138] sm:$0xff] %vm717_vm1, %v2296_v50  ;;  %v1214_v41 = vsel %vm717_vm1, %v1614_v31, 0.0 }
  0xf3   :  { %v1209_v32 = vadd.f32 %v1208_v13, %v1207_v30  ;;  %v1408_v33 = vadd.f32 %v1407_v17, %v1406_v29  ;;  %v529_v61 = vpop.f32.mrf.mxu0  ;;  %v2309_v4 = vpop.f32.mrf.mxu1 }
  0xf4   :  { %735 = vst.msk [vmem:[%s2733_s4 + $0x88] sm:$0xff] %vm717_vm1, %v529_v61  ;;  %v1210_v35 = vsel %vm717_vm1, %v529_v61, 0.0  ;;  %v1331_v46 = vmul.f32 %v529_v61, %v529_v61  ;;  %755 = vst.msk [vmem:[%s2733_s4 + $0x128] sm:$0xff] %vm717_vm1, %v2309_v4  ;;  %v1415_v5 = vsel %vm717_vm1, %v1333_v27, 0.0 }
  0xf5   :  { %v1410_v49 = vadd.f32 %v1409_v62, %v1408_v33  ;;  %v1211_v3 = vadd.f32 %v1210_v35, %v1209_v32  ;;  %v1617_v63 = vpop.f32.mrf.mxu0  ;;  %v2322_v25 = vpop.f32.mrf.mxu1 }
  0xf6   :  { %v1411_v37 = vsel %vm717_vm1, %v1331_v46, 0.0  ;;  %740 = vst.msk [vmem:[%s2733_s4 + $0xb0] sm:$0xff] %vm717_vm1, %v1617_v63  ;;  %760 = vst.msk [vmem:[%s2733_s4 + $0x150] sm:$0xff] %vm717_vm1, %v2322_v25  ;;  %v1336_v52 = vmul.f32 %v1617_v63, %v1617_v63  ;;  %v1220_v2 = vsel %vm717_vm1, %v1617_v63, 0.0 }
  0xf7   :  { %v1213_v36 = vadd.f32 %v1212_v11, %v1211_v3  ;;  %v1412_v38 = vadd.f32 %v1411_v37, %v1410_v49  ;;  %v542_v39 = vpop.f32.mrf.mxu0  ;;  %v2335_v51 = vpop.f32.mrf.mxu1 }
  0xf8   :  { %738 = vst.msk [vmem:[%s2733_s4 + $0xa0] sm:$0xff] %vm717_vm1, %v542_v39  ;;  %v1334_v42 = vmul.f32 %v542_v39, %v542_v39  ;;  %v1216_v44 = vsel %vm717_vm1, %v542_v39, 0.0  ;;  %758 = vst.msk [vmem:[%s2733_s4 + $0x140] sm:$0xff] %vm717_vm1, %v2335_v51  ;;  %v1421_v19 = vsel %vm717_vm1, %v1336_v52, 0.0 }
  0xf9   :  { %v1414_v54 = vadd.f32 %v1413_v40, %v1412_v38  ;;  %v1215_v43 = vadd.f32 %v1214_v41, %v1213_v36  ;;  %v1618_v6 = vpop.f32.mrf.mxu0  ;;  %v2348_v1 = vpop.f32.mrf.mxu1 }
  0xfa   :  { %741 = vst.msk [vmem:[%s2733_s4 + $0xb8] sm:$0xff] %vm717_vm1, %v1618_v6  ;;  %v1417_v55 = vsel %vm717_vm1, %v1334_v42, 0.0  ;;  %v1337_v7 = vmul.f32 %v1618_v6, %v1618_v6  ;;  %761 = vst.msk [vmem:[%s2733_s4 + $0x158] sm:$0xff] %vm717_vm1, %v2348_v1  ;;  %v1222_v20 = vsel %vm717_vm1, %v1618_v6, 0.0 }
  0xfb   :  { %v1217_v45 = vadd.f32 %v1216_v44, %v1215_v43  ;;  %v1416_v47 = vadd.f32 %v1415_v5, %v1414_v54  ;;  %v545_v48 = vpop.f32.mrf.mxu0  ;;  %v2361_v16 = vpop.f32.mrf.mxu1 }
  0xfc   :  { %739 = vst.msk [vmem:[%s2733_s4 + $0xa8] sm:$0xff] %vm717_vm1, %v545_v48  ;;  %v1218_v56 = vsel %vm717_vm1, %v545_v48, 0.0  ;;  %v1335_v57 = vmul.f32 %v545_v48, %v545_v48  ;;  %759 = vst.msk [vmem:[%s2733_s4 + $0x148] sm:$0xff] %vm717_vm1, %v2361_v16  ;;  %v1423_v29 = vsel %vm717_vm1, %v1337_v7, 0.0 }
  0xfd   :  { %v1418_v58 = vadd.f32 %v1417_v55, %v1416_v47  ;;  %v1219_v59 = vadd.f32 %v1218_v56, %v1217_v45  ;;  %v1621_v0 = vpop.f32.mrf.mxu0  ;;  %v2374_v28 = vpop.f32.mrf.mxu1 }
  0xfe   :  { %v1419_v9 = vsel %vm717_vm1, %v1335_v57, 0.0  ;;  %744 = vst.msk [vmem:[%s2733_s4 + $0xd0] sm:$0xff] %vm717_vm1, %v1621_v0  ;;  %764 = vst.msk [vmem:[%s2733_s4 + $0x170] sm:$0xff] %vm717_vm1, %v2374_v28  ;;  %v1340_v33 = vmul.f32 %v1621_v0, %v1621_v0  ;;  %v1228_v63 = vsel %vm717_vm1, %v1621_v0, 0.0 }
  0xff   :  { %v1221_v10 = vadd.f32 %v1220_v2, %v1219_v59  ;;  %v1420_v12 = vadd.f32 %v1419_v9, %v1418_v58  ;;  %v558_v15 = vpop.f32.mrf.mxu0  ;;  %v2387_v32 = vpop.f32.mrf.mxu1 }
 0x100   :  { %742 = vst.msk [vmem:[%s2733_s4 + $0xc0] sm:$0xff] %vm717_vm1, %v558_v15  ;;  %v1338_v21 = vmul.f32 %v558_v15, %v558_v15  ;;  %v1224_v30 = vsel %vm717_vm1, %v558_v15, 0.0  ;;  %762 = vst.msk [vmem:[%s2733_s4 + $0x160] sm:$0xff] %vm717_vm1, %v2387_v32  ;;  %v1429_v40 = vsel %vm717_vm1, %v1340_v33, 0.0 }
 0x101   :  { %v1422_v22 = vadd.f32 %v1421_v19, %v1420_v12  ;;  %v1223_v24 = vadd.f32 %v1222_v20, %v1221_v10  ;;  %v1622_v26 = vpop.f32.mrf.mxu0  ;;  %v2400_v3 = vpop.f32.mrf.mxu1 }
 0x102   :  { %745 = vst.msk [vmem:[%s2733_s4 + $0xd8] sm:$0xff] %vm717_vm1, %v1622_v26  ;;  %v1425_v61 = vsel %vm717_vm1, %v1338_v21, 0.0  ;;  %v1341_v11 = vmul.f32 %v1622_v26, %v1622_v26  ;;  %765 = vst.msk [vmem:[%s2733_s4 + $0x178] sm:$0xff] %vm717_vm1, %v2400_v3  ;;  %v1230_v41 = vsel %vm717_vm1, %v1622_v26, 0.0 }
 0x103   :  { %v1225_v31 = vadd.f32 %v1224_v30, %v1223_v24  ;;  %v1424_v17 = vadd.f32 %v1423_v29, %v1422_v22  ;;  %v561_v13 = vpop.f32.mrf.mxu0  ;;  %v2413_v39 = vpop.f32.mrf.mxu1  ;;  %v1346_v24 = vmul.f32 %v2231_v60, %v2231_v60 }
 0x104   :  { %743 = vst.msk [vmem:[%s2733_s4 + $0xc8] sm:$0xff] %vm717_vm1, %v561_v13  ;;  %v1226_v34 = vsel %vm717_vm1, %v561_v13, 0.0  ;;  %v1339_v62 = vmul.f32 %v561_v13, %v561_v13  ;;  %763 = vst.msk [vmem:[%s2733_s4 + $0x168] sm:$0xff] %vm717_vm1, %v2413_v39  ;;  %v1431_v44 = vsel %vm717_vm1, %v1341_v11, 0.0  ;;  %v1347_v13 = vmul.f32 %v2257_v23, %v2257_v23 }
 0x105   :  { %v1426_v35 = vadd.f32 %v1425_v61, %v1424_v17  ;;  %v1227_v46 = vadd.f32 %v1226_v34, %v1225_v31  ;;  %v1625_v49 = vpop.f32.mrf.mxu0  ;;  %v2426_v5 = vpop.f32.mrf.mxu1  ;;  %v1240_v17 = vsel %vm717_vm1, %v2231_v60, 0.0  ;;  %v1242_v60 = vsel %vm717_vm1, %v2257_v23, 0.0 }
 0x106   :  { %v1427_v27 = vsel %vm717_vm1, %v1339_v62, 0.0  ;;  %748 = vst.msk [vmem:[%s2733_s4 + $0xf0] sm:$0xff] %vm717_vm1, %v1625_v49  ;;  %768 = vst.msk [vmem:[%s2733_s4 + $0x190] sm:$0xff] %vm717_vm1, %v2426_v5  ;;  %v1344_v56 = vmul.f32 %v1625_v49, %v1625_v49  ;;  %v1236_v9 = vsel %vm717_vm1, %v1625_v49, 0.0  ;;  %v1348_v62 = vmul.f32 %v2218_v53, %v2218_v53 }
 0x107   :  { %v1229_v37 = vadd.f32 %v1228_v63, %v1227_v46  ;;  %v1428_v36 = vadd.f32 %v1427_v27, %v1426_v35  ;;  %v574_v38 = vpop.f32.mrf.mxu0  ;;  %v2439_v55 = vpop.f32.mrf.mxu1  ;;  %v1441_v35 = vsel %vm717_vm1, %v1346_v24, 0.0  ;;  %v1244_v11 = vsel %vm717_vm1, %v2218_v53, 0.0 }
 0x108   :  { %746 = vst.msk [vmem:[%s2733_s4 + $0xe0] sm:$0xff] %vm717_vm1, %v574_v38  ;;  %v1342_v42 = vmul.f32 %v574_v38, %v574_v38  ;;  %v1232_v45 = vsel %vm717_vm1, %v574_v38, 0.0  ;;  %766 = vst.msk [vmem:[%s2733_s4 + $0x180] sm:$0xff] %vm717_vm1, %v2439_v55  ;;  %v1437_v21 = vsel %vm717_vm1, %v1344_v56, 0.0  ;;  %v1349_v27 = vmul.f32 %v2244_v14, %v2244_v14 }
 0x109   :  { %v1430_v54 = vadd.f32 %v1429_v40, %v1428_v36  ;;  %v1231_v43 = vadd.f32 %v1230_v41, %v1229_v37  ;;  %v1626_v6 = vpop.f32.mrf.mxu0  ;;  %v2452_v7 = vpop.f32.mrf.mxu1  ;;  %v1443_v37 = vsel %vm717_vm1, %v1347_v13, 0.0  ;;  %v1445_v40 = vsel %vm717_vm1, %v1348_v62, 0.0 }
 0x10a   :  { %749 = vst.msk [vmem:[%s2733_s4 + $0xf8] sm:$0xff] %vm717_vm1, %v1626_v6  ;;  %v1433_v57 = vsel %vm717_vm1, %v1342_v42, 0.0  ;;  %v1345_v10 = vmul.f32 %v1626_v6, %v1626_v6  ;;  %769 = vst.msk [vmem:[%s2733_s4 + $0x198] sm:$0xff] %vm717_vm1, %v2452_v7  ;;  %v1238_v22 = vsel %vm717_vm1, %v1626_v6, 0.0  ;;  %v1246_v53 = vsel %vm717_vm1, %v2244_v14, 0.0 }
 0x10b   :  { %v1233_v47 = vadd.f32 %v1232_v45, %v1231_v43  ;;  %v1432_v48 = vadd.f32 %v1431_v44, %v1430_v54  ;;  %v577_v52 = vpop.f32.mrf.mxu0  ;;  %v2461_v20 = vpop.f32.mrf.mxu1  ;;  %v1350_v41 = vmul.f32 %v2283_v18, %v2283_v18  ;;  %v1447_v6 = vsel %vm717_vm1, %v1349_v27, 0.0 }
 0x10c   :  { %747 = vst.msk [vmem:[%s2733_s4 + $0xe8] sm:$0xff] %vm717_vm1, %v577_v52  ;;  %v1234_v58 = vsel %vm717_vm1, %v577_v52, 0.0  ;;  %v1343_v59 = vmul.f32 %v577_v52, %v577_v52  ;;  %767 = vst.msk [vmem:[%s2733_s4 + $0x188] sm:$0xff] %vm717_vm1, %v2461_v20  ;;  %v1439_v31 = vsel %vm717_vm1, %v1345_v10, 0.0  ;;  %v1248_v44 = vsel %vm717_vm1, %v2283_v18, 0.0 }
 0x10d   :  { %v1434_v0 = vadd.f32 %v1433_v57, %v1432_v48  ;;  %v1235_v2 = vadd.f32 %v1234_v58, %v1233_v47  ;;  %v2472_v30 = vpop.f32.mrf.mxu1  ;;  %v1351_v14 = vmul.f32 %v2309_v4, %v2309_v4  ;;  %v1352_v52 = vmul.f32 %v2270_v8, %v2270_v8 }
 0x10e   :  { %v1435_v12 = vsel %vm717_vm1, %v1343_v59, 0.0  ;;  %772 = vst.msk [vmem:[%s2733_s4 + $0x1b0] sm:$0xff] %vm717_vm1, %v2472_v30  ;;  %v1449_v56 = vsel %vm717_vm1, %v1350_v41, 0.0  ;;  %v1250_v18 = vsel %vm717_vm1, %v2309_v4, 0.0 }
 0x10f   :  { %v1237_v15 = vadd.f32 %v1236_v9, %v1235_v2  ;;  %v1436_v19 = vadd.f32 %v1435_v12, %v1434_v0  ;;  %v2484_v34 = vpop.f32.mrf.mxu1  ;;  %v1252_v0 = vsel %vm717_vm1, %v2270_v8, 0.0  ;;  %v1353_v2 = vmul.f32 %v2296_v50, %v2296_v50 }
 0x110   :  { %770 = vst.msk [vmem:[%s2733_s4 + $0x1a0] sm:$0xff] %vm717_vm1, %v2484_v34  ;;  %v1451_v9 = vsel %vm717_vm1, %v1351_v14, 0.0  ;;  %v1254_v8 = vsel %vm717_vm1, %v2296_v50, 0.0  ;;  %v1355_v50 = vmul.f32 %v2361_v16, %v2361_v16 }
 0x111   :  { %v1239_v26 = vadd.f32 %v1238_v22, %v1237_v15  ;;  %v1438_v29 = vadd.f32 %v1437_v21, %v1436_v19  ;;  %v2496_v63 = vpop.f32.mrf.mxu1  ;;  %v1453_v15 = vsel %vm717_vm1, %v1352_v52, 0.0  ;;  %v1354_v19 = vmul.f32 %v2335_v51, %v2335_v51 }
 0x112   :  { %773 = vst.msk [vmem:[%s2733_s4 + $0x1b8] sm:$0xff] %vm717_vm1, %v2496_v63 }
 0x113   :  { %v1440_v33 = vadd.f32 %v1439_v31, %v1438_v29  ;;  %v1241_v61 = vadd.f32 %v1240_v17, %v1239_v26  ;;  %v2508_v38 = vpop.f32.mrf.mxu1  ;;  %v1455_v26 = vsel %vm717_vm1, %v1353_v2, 0.0  ;;  %v1256_v29 = vsel %vm717_vm1, %v2335_v51, 0.0 }
 0x114   :  { %771 = vst.msk [vmem:[%s2733_s4 + $0x1a8] sm:$0xff] %vm717_vm1, %v2508_v38  ;;  %v1258_v51 = vsel %vm717_vm1, %v2361_v16, 0.0  ;;  %v1270_v2 = vsel %vm717_vm1, %v2400_v3, 0.0 }
 0x115   :  { %v1243_v46 = vadd.f32 %v1242_v60, %v1241_v61  ;;  %v1442_v49 = vadd.f32 %v1441_v35, %v1440_v33  ;;  %v2520_v43 = vpop.f32.mrf.mxu1  ;;  %v1356_v33 = vmul.f32 %v2322_v25, %v2322_v25  ;;  %v1457_v61 = vsel %vm717_vm1, %v1354_v19, 0.0 }
 0x116   :  { %776 = vst.msk [vmem:[%s2733_s4 + $0x1d0] sm:$0xff] %vm717_vm1, %v2520_v43 }
 0x117   :  { %v1245_v23 = vadd.f32 %v1244_v11, %v1243_v46  ;;  %v1444_v36 = vadd.f32 %v1443_v37, %v1442_v49  ;;  %v2532_v48 = vpop.f32.mrf.mxu1  ;;  %v1260_v46 = vsel %vm717_vm1, %v2322_v25, 0.0  ;;  %v1357_v49 = vmul.f32 %v2348_v1, %v2348_v1 }
 0x118   :  { %774 = vst.msk [vmem:[%s2733_s4 + $0x1c0] sm:$0xff] %vm717_vm1, %v2532_v48  ;;  %v1459_v11 = vsel %vm717_vm1, %v1355_v50, 0.0  ;;  %v1262_v25 = vsel %vm717_vm1, %v2348_v1, 0.0  ;;  %v1276_v50 = vsel %vm717_vm1, %v2426_v5, 0.0 }
 0x119   :  { %v1446_v42 = vadd.f32 %v1445_v40, %v1444_v36  ;;  %v1247_v54 = vadd.f32 %v1246_v53, %v1245_v23  ;;  %v2544_v59 = vpop.f32.mrf.mxu1  ;;  %v1461_v23 = vsel %vm717_vm1, %v1356_v33, 0.0  ;;  %v1358_v36 = vmul.f32 %v2387_v32, %v2387_v32 }
 0x11a   :  { %777 = vst.msk [vmem:[%s2733_s4 + $0x1d8] sm:$0xff] %vm717_vm1, %v2544_v59  ;;  %v1463_v41 = vsel %vm717_vm1, %v1357_v49, 0.0  ;;  %v1367_v49 = vmul.f32 %v2508_v38, %v2508_v38 }
 0x11b   :  { %v1249_v45 = vadd.f32 %v1248_v44, %v1247_v54  ;;  %v1448_v47 = vadd.f32 %v1447_v6, %v1446_v42  ;;  %v2556_v12 = vpop.f32.mrf.mxu1  ;;  %v1264_v42 = vsel %vm717_vm1, %v2387_v32, 0.0  ;;  %v1359_v54 = vmul.f32 %v2413_v39, %v2413_v39 }
 0x11c   :  { %775 = vst.msk [vmem:[%s2733_s4 + $0x1c8] sm:$0xff] %vm717_vm1, %v2556_v12  ;;  %v1360_v44 = vmul.f32 %v2374_v28, %v2374_v28  ;;  %v1465_v14 = vsel %vm717_vm1, %v1358_v36, 0.0  ;;  %v1361_v32 = vmul.f32 %v2400_v3, %v2400_v3 }
 0x11d   :  { %v1450_v57 = vadd.f32 %v1449_v56, %v1448_v47  ;;  %v1251_v58 = vadd.f32 %v1250_v18, %v1249_v45  ;;  %v2568_v24 = vpop.f32.mrf.mxu1  ;;  %v1266_v45 = vsel %vm717_vm1, %v2413_v39, 0.0  ;;  %v1268_v56 = vsel %vm717_vm1, %v2374_v28, 0.0 }
 0x11e   :  { %780 = vst.msk [vmem:[%s2733_s4 + $0x1f0] sm:$0xff] %vm717_vm1, %v2568_v24  ;;  %v1467_v18 = vsel %vm717_vm1, %v1359_v54, 0.0  ;;  %v1362_v39 = vmul.f32 %v2439_v55, %v2439_v55  ;;  %v1272_v28 = vsel %vm717_vm1, %v2439_v55, 0.0  ;;  %v1365_v55 = vmul.f32 %v2452_v7, %v2452_v7 }
 0x11f   :  { %v1253_v4 = vadd.f32 %v1252_v0, %v1251_v58  ;;  %v1452_v10 = vadd.f32 %v1451_v9, %v1450_v57  ;;  %v2580_v13 = vpop.f32.mrf.mxu1  ;;  %v1469_v0 = vsel %vm717_vm1, %v1360_v44, 0.0 }
 0x120   :  { %778 = vst.msk [vmem:[%s2733_s4 + $0x1e0] sm:$0xff] %vm717_vm1, %v2580_v13  ;;  %v1473_v3 = vsel %vm717_vm1, %v1362_v39, 0.0 }
 0x121   :  { %v1454_v21 = vadd.f32 %v1453_v15, %v1452_v10  ;;  %v1255_v22 = vadd.f32 %v1254_v8, %v1253_v4  ;;  %v2592_v60 = vpop.f32.mrf.mxu1  ;;  %v1471_v10 = vsel %vm717_vm1, %v1361_v32, 0.0  ;;  %v1363_v15 = vmul.f32 %v2461_v20, %v2461_v20 }
 0x122   :  { %781 = vst.msk [vmem:[%s2733_s4 + $0x1f8] sm:$0xff] %vm717_vm1, %v2592_v60  ;;  %v1290_v32 = vsel %vm717_vm1, %v2556_v12, 0.0 }
 0x123   :  { %v1257_v31 = vadd.f32 %v1256_v29, %v1255_v22  ;;  %v1456_v17 = vadd.f32 %v1455_v26, %v1454_v21  ;;  %v2604_v37 = vpop.f32.mrf.mxu1  ;;  %v1364_v21 = vmul.f32 %v2426_v5, %v2426_v5  ;;  %v1274_v22 = vsel %vm717_vm1, %v2461_v20, 0.0 }
 0x124   :  { %779 = vst.msk [vmem:[%s2733_s4 + $0x1e8] sm:$0xff] %vm717_vm1, %v2604_v37  ;;  %v1366_v20 = vmul.f32 %v2484_v34, %v2484_v34  ;;  %v1280_v5 = vsel %vm717_vm1, %v2484_v34, 0.0  ;;  %v1369_v34 = vmul.f32 %v2496_v63, %v2496_v63 }
 0x125   :  { %v1458_v62 = vadd.f32 %v1457_v61, %v1456_v17  ;;  %v1259_v35 = vadd.f32 %v1258_v51, %v1257_v31  ;;  %v1475_v31 = vsel %vm717_vm1, %v1363_v15, 0.0  ;;  %v1477_v61 = vsel %vm717_vm1, %v1364_v21, 0.0 }
 0x126   :  { %v1278_v51 = vsel %vm717_vm1, %v2452_v7, 0.0  ;;  %v1481_v7 = vsel %vm717_vm1, %v1366_v20, 0.0 }
 0x127   :  { %v1261_v16 = vadd.f32 %v1260_v46, %v1259_v35  ;;  %v1460_v27 = vadd.f32 %v1459_v11, %v1458_v62  ;;  %v1479_v46 = vsel %vm717_vm1, %v1365_v55, 0.0 }
 0x129   :  { %v1462_v40 = vadd.f32 %v1461_v23, %v1460_v27  ;;  %v1263_v53 = vadd.f32 %v1262_v25, %v1261_v16  ;;  %v1368_v27 = vmul.f32 %v2472_v30, %v2472_v30  ;;  %v1282_v23 = vsel %vm717_vm1, %v2508_v38, 0.0 }
 0x12a   :  { %v1370_v38 = vmul.f32 %v2532_v48, %v2532_v48 }
 0x12b   :  { %v1265_v1 = vadd.f32 %v1264_v42, %v1263_v53  ;;  %v1464_v6 = vadd.f32 %v1463_v41, %v1462_v40  ;;  %v1284_v40 = vsel %vm717_vm1, %v2472_v30, 0.0  ;;  %v1483_v53 = vsel %vm717_vm1, %v1367_v49, 0.0 }
 0x12c   :  { %v1485_v54 = vsel %vm717_vm1, %v1368_v27, 0.0  ;;  %v1288_v30 = vsel %vm717_vm1, %v2532_v48, 0.0  ;;  %v1373_v48 = vmul.f32 %v2544_v59, %v2544_v59 }
 0x12d   :  { %v1466_v47 = vadd.f32 %v1465_v14, %v1464_v6  ;;  %v1267_v52 = vadd.f32 %v1266_v45, %v1265_v1  ;;  %v1286_v1 = vsel %vm717_vm1, %v2496_v63, 0.0  ;;  %v1487_v14 = vsel %vm717_vm1, %v1369_v34, 0.0 }
 0x12e   :  { %v1371_v45 = vmul.f32 %v2556_v12, %v2556_v12  ;;  %v1489_v63 = vsel %vm717_vm1, %v1370_v38, 0.0  ;;  %v1374_v12 = vmul.f32 %v2580_v13, %v2580_v13  ;;  %v1495_v15 = vsel %vm717_vm1, %v1373_v48, 0.0 }
 0x12f   :  { %v1269_v57 = vadd.f32 %v1268_v56, %v1267_v52  ;;  %v1468_v58 = vadd.f32 %v1467_v18, %v1466_v47  ;;  %v1372_v56 = vmul.f32 %v2520_v43, %v2520_v43 }
 0x131   :  { %v1470_v9 = vadd.f32 %v1469_v0, %v1468_v58  ;;  %v1271_v4 = vadd.f32 %v1270_v2, %v1269_v57  ;;  %v1292_v58 = vsel %vm717_vm1, %v2520_v43, 0.0  ;;  %v1491_v0 = vsel %vm717_vm1, %v1371_v45, 0.0 }
 0x132   :  { %v1296_v43 = vsel %vm717_vm1, %v2580_v13, 0.0  ;;  %v1377_v13 = vmul.f32 %v2592_v60, %v2592_v60 }
 0x133   :  { %v1273_v8 = vadd.f32 %v1272_v28, %v1271_v4  ;;  %v1472_v19 = vadd.f32 %v1471_v10, %v1470_v9  ;;  %v1493_v9 = vsel %vm717_vm1, %v1372_v56, 0.0  ;;  %v1294_v4 = vsel %vm717_vm1, %v2544_v59, 0.0 }
 0x134   :  { %v1497_v59 = vsel %vm717_vm1, %v1374_v12, 0.0 }
 0x135   :  { %v1474_v26 = vadd.f32 %v1473_v3, %v1472_v19  ;;  %v1275_v29 = vadd.f32 %v1274_v22, %v1273_v8  ;;  %v1375_v8 = vmul.f32 %v2604_v37, %v2604_v37  ;;  %v1376_v3 = vmul.f32 %v2568_v24, %v2568_v24 }
 0x136   :  { %v1298_v22 = vsel %vm717_vm1, %v2604_v37, 0.0  ;;  %v1503_v37 = vsel %vm717_vm1, %v1377_v13, 0.0 }
 0x137   :  { %v1277_v17 = vadd.f32 %v1276_v50, %v1275_v29  ;;  %v1476_v33 = vadd.f32 %v1475_v31, %v1474_v26  ;;  %v1300_v50 = vsel %vm717_vm1, %v2568_v24, 0.0  ;;  %v1499_v55 = vsel %vm717_vm1, %v1375_v8, 0.0 }
 0x139   :  { %v1478_v62 = vadd.f32 %v1477_v61, %v1476_v33  ;;  %v1279_v35 = vadd.f32 %v1278_v51, %v1277_v17  ;;  %v1501_v33 = vsel %vm717_vm1, %v1376_v3, 0.0  ;;  %v1302_v61 = vsel %vm717_vm1, %v2592_v60, 0.0 }
 0x13b   :  { %v1281_v11 = vadd.f32 %v1280_v5, %v1279_v35  ;;  %v1480_v16 = vadd.f32 %v1479_v46, %v1478_v62 }
 0x13d   :  { %v1482_v25 = vadd.f32 %v1481_v7, %v1480_v16  ;;  %v1283_v36 = vadd.f32 %v1282_v23, %v1281_v11  ;;  %v1176_v23 = vld [vmem:[%s2734_s5] sm:$0x1] }
 0x13f   :  { %v1285_v41 = vadd.f32 %v1284_v40, %v1283_v36  ;;  %v1484_v42 = vadd.f32 %v1483_v53, %v1482_v25  ;;  %v1313_v36 = vld [vmem:[%s2735_s6] sm:$0x1] }
 0x141   :  { %v1486_v6 = vadd.f32 %v1485_v54, %v1484_v42  ;;  %v1287_v44 = vadd.f32 %v1286_v1, %v1285_v41 }
 0x143   :  { %v1289_v47 = vadd.f32 %v1288_v30, %v1287_v44  ;;  %v1488_v52 = vadd.f32 %v1487_v14, %v1486_v6 }
 0x145   :  { %v1490_v18 = vadd.f32 %v1489_v63, %v1488_v52  ;;  %v1291_v57 = vadd.f32 %v1290_v32, %v1289_v47 }
 0x147   :  { %v1293_v2 = vadd.f32 %v1292_v58, %v1291_v57  ;;  %v1492_v39 = vadd.f32 %v1491_v0, %v1490_v18 }
 0x149   :  { %v1494_v10 = vadd.f32 %v1493_v9, %v1492_v39  ;;  %v1295_v28 = vadd.f32 %v1294_v4, %v1293_v2 }
 0x14b   :  { %v1297_v19 = vadd.f32 %v1296_v43, %v1295_v28  ;;  %v1496_v21 = vadd.f32 %v1495_v15, %v1494_v10 }
 0x14d   :  { %v1498_v26 = vadd.f32 %v1497_v59, %v1496_v21  ;;  %v1299_v29 = vadd.f32 %v1298_v22, %v1297_v19 }
 0x14f   :  { %v1301_v31 = vadd.f32 %v1300_v50, %v1299_v29  ;;  %v1500_v17 = vadd.f32 %v1499_v55, %v1498_v26 }
 0x151   :  { %v1303_v51 = vadd.f32 %v1302_v61, %v1301_v31  ;;  %v1502_v20 = vadd.f32 %v1501_v33, %v1500_v17 }
 0x153   :  { %v1304_v62 = vrot.slane %v1303_v51, 4  ;;  %v1504_v35 = vadd.f32 %v1503_v37, %v1502_v20 }
 0x155   :  { %v1305_v46 = vadd.f32 %v1304_v62, %v1303_v51  ;;  %v1505_v24 = vrot.slane %v1504_v35, 4 }
 0x157   :  { %v1306_v5 = vrot.slane %v1305_v46, 2  ;;  %v1506_v49 = vadd.f32 %v1505_v24, %v1504_v35 }
 0x159   :  { %v1307_v11 = vadd.f32 %v1306_v5, %v1305_v46  ;;  %v1507_v16 = vrot.slane %v1506_v49, 2 }
 0x15b   :  { %v1308_v27 = vrot.slane %v1307_v11, 1  ;;  %v1508_v7 = vadd.f32 %v1507_v16, %v1506_v49 }
 0x15d   :  { %v1309_v25 = vadd.f32 %v1308_v27, %v1307_v11  ;;  %v1509_v60 = vrot.slane %v1508_v7, 1 }
 0x15f   :  { %v1310_v40 = vadd.f32 %v1309_v25, %v1176_v23  ;;  %v1510_v34 = vadd.f32 %v1509_v60, %v1508_v7 }
 0x161   :  { %1312 = vst.msk [vmem:[%s2734_s5] sm:$0x1] %vm1173_vm2, %v1310_v40  ;;  %v1511_v53 = vadd.f32 %v1510_v34, %v1313_v36 }
 0x163   :  { %1512 = vst.msk [vmem:[%s2735_s6] sm:$0x1] %vm1173_vm2, %v1511_v53 }

// kernel: dense_layer_forward.3
= control target key start
LH: loop header
LB: loop body
LE: loop exit
PB: predicated region body
PF: predicated region fallthrough
CT: control target
= control target key end

     0   :  { %s2037_s15 = smov 0   ;;  %s2388_s0 = inlined_call_operand.vmem [shape: f32[2,16,512], index: 0, kind: input, shape index: {}]   ;;  %s2389_s1 = inlined_call_operand.vmem [shape: f32[1,512], index: 1, kind: input, shape index: {}]   ;;  %s2390_s2 = inlined_call_operand.vmem [shape: f32[1,512], index: 2, kind: input, shape index: {}]   ;;  %s2391_s3 = inlined_call_operand.vmem [shape: bf16[3,512,128], index: 3, kind: input, shape index: {}]   ;;  %s2392_s4 = inlined_call_operand.vmem [shape: f32[2,16,128], index: 4, kind: output, shape index: {}]  }
   0x1 LB: > { %s1529_s16 = sadd.s32 4294967295, %s2009_s15   ;;  %p1533_p0 = scmp.ge.s32.totalorder %s2009_s15, 1  ;;  %s2009_s15 = sphi %s2037_s15, %s14_s15  }
   0x2   : > { %p162_p1 = scmp.lt.s32.totalorder %s2009_s15, 3 }
   0x4   : > { %p163_p2 = pnand %p1533_p0, %p162_p1 }
   0x5   : > { %p188_p3 = scmp.lt.s32.totalorder (!%p163_p2), %s1529_s16, 1 }
   0x6   : > { %166 = sbr.rel (%p163_p2) target bundleno = 327 (0x147), region = 36 }
   0xb   : > { %v1907_v0 = vld [vmem:[%s2391_s3 + $0x178] sm:$0xff]   ;;  %v2011_v3 = vmov 0.0   ;;  %v1911_v5 = vld [vmem:[%s2391_s3 + $0x170] sm:$0xff]   ;;  %v1915_v9 = vld [vmem:[%s2391_s3 + $0x168] sm:$0xff]   ;;  %v209_v20 = vlaneseq  ;;  %s2394_s16 = smov (!%p188_p3, %s1529_s16), 1  ;;  %vm295_vm0 = vcmask 1040384  }
   0xc   : > { %v1908_v1 = vld [vmem:[%s2391_s3 + $0x1f8] sm:$0xff]   ;;  %1766 = vmatprep.subr.bf16.mxu0 %v1907_v0  ;;  %276 = vst [vmem:[#allocation2] sm:$0xff] %v2011_v3  ;;  %284 = vst [vmem:[#allocation2 + $0x48] sm:$0x3] %v2011_v3  ;;  %v1912_v6 = vld [vmem:[%s2391_s3 + $0x1f0] sm:$0xff]   ;;  %s1764_s21 = sshll.u32 %s2394_s16, 6 }
   0xd   : > { %v1909_v2 = vld [vmem:[%s2391_s3 + $0x138] sm:$0xff]   ;;  %275 = vst [vmem:[#allocation2 + $0x30] sm:$0xff] %v2011_v3  ;;  %277 = vst [vmem:[#allocation2 + $0x58] sm:$0xff] %v2011_v3  ;;  %1788 = vmatprep.subr.bf16.mxu1 %v1908_v1  ;;  %v1913_v7 = vld [vmem:[%s2391_s3 + $0x130] sm:$0xff]   ;;  %v210_v25 = vshrl.u32 %v209_v20, 7  ;;  %s192_s6 = scalar_lea.vmem %s2388_s0, %s1764_s21  ;;  %vm1179_vm2 = vcmask 1046528  }
   0xe   : > { %278 = vst [vmem:[#allocation2 + $0x18] sm:$0xff] %v2011_v3  ;;  %283 = vst [vmem:[#allocation2 + $0x28] sm:$0x3] %v2011_v3  ;;  %v1910_v4 = vld [vmem:[%s2391_s3 + $0x1b8] sm:$0xff]   ;;  %1767 = vmatpush3.bf16.msra.mxu0 %v1909_v2  ;;  %v1914_v8 = vld [vmem:[%s2391_s3 + $0x1b0] sm:$0xff]   ;;  %s1765_s25 = sshll.u32 %s2394_s16, 4 }
   0xf   : > { %285 = vst [vmem:[#allocation2 + $0x10] sm:$0x3] %v2011_v3  ;;  %286 = vst [vmem:[#allocation2 + $0x40] sm:$0x3] %v2011_v3  ;;  %1789 = vmatpush3.bf16.msra.mxu1 %v1910_v4  ;;  %1768 = vmatprep.subr.bf16.mxu0 %v1911_v5  ;;  %v1916_v10 = vld [vmem:[%s2391_s3 + $0x1e8] sm:$0xff]   ;;  %v1919_v13 = vld [vmem:[%s2391_s3 + $0x160] sm:$0xff]   ;;  %s197_s28 = scalar_lea.vmem %s2392_s4, %s1765_s25 }
  0x10   : > { %1790 = vmatprep.subr.bf16.mxu1 %v1912_v6  ;;  %v1917_v11 = vld [vmem:[%s2391_s3 + $0x128] sm:$0xff]   ;;  %v1920_v14 = vld [vmem:[%s2391_s3 + $0x1e0] sm:$0xff]   ;;  %v1923_v17 = vld [vmem:[%s2391_s3 + $0x158] sm:$0xff]   ;;  %v215_v30 = vsub.s32 1, %v210_v25  ;;  %v223_v32 = vsub.s32 3, %v210_v25  ;;  %v211_v34 = vsub.s32 0, %v210_v25 }
  0x11   : > { %v1918_v12 = vld [vmem:[%s2391_s3 + $0x1a8] sm:$0xff]   ;;  %v1921_v15 = vld [vmem:[%s2391_s3 + $0x120] sm:$0xff]   ;;  %v1924_v18 = vld [vmem:[%s2391_s3 + $0x1d8] sm:$0xff]   ;;  %v219_v36 = vsub.s32 2, %v210_v25  ;;  %vm489_vm1 = vsmask.f32 7424 }
  0x12   : > { %1769 = vmatpush3.bf16.msra.mxu0 %v1913_v7  ;;  %v1922_v16 = vld [vmem:[%s2391_s3 + $0x1a0] sm:$0xff]   ;;  %v1925_v19 = vld [vmem:[%s2391_s3 + $0x118] sm:$0xff]   ;;  %v1927_v22 = vld [vmem:[%s2391_s3 + $0x150] sm:$0xff]  }
  0x13   : > { %1791 = vmatpush3.bf16.msra.mxu1 %v1914_v8  ;;  %1770 = vmatprep.subr.bf16.mxu0 %v1915_v9  ;;  %v1926_v21 = vld [vmem:[%s2391_s3 + $0x198] sm:$0xff]   ;;  %v1928_v23 = vld [vmem:[%s2391_s3 + $0x1d0] sm:$0xff]   ;;  %v1931_v27 = vld [vmem:[%s2391_s3 + $0x148] sm:$0xff]  }
  0x14   : > { %1792 = vmatprep.subr.bf16.mxu1 %v1916_v10  ;;  %v1929_v24 = vld [vmem:[%s2391_s3 + $0x110] sm:$0xff]   ;;  %v1932_v28 = vld [vmem:[%s2391_s3 + $0x1c8] sm:$0xff]   ;;  %v1935_v33 = vld [vmem:[%s2391_s3 + $0x140] sm:$0xff]  }
  0x15   : > { %v1930_v26 = vld [vmem:[%s2391_s3 + $0x190] sm:$0xff]   ;;  %v1933_v29 = vld [vmem:[%s2391_s3 + $0x108] sm:$0xff]   ;;  %v1936_v35 = vld [vmem:[%s2391_s3 + $0x1c0] sm:$0xff]  }
  0x16   : > { %1771 = vmatpush3.bf16.msra.mxu0 %v1917_v11  ;;  %v1934_v31 = vld [vmem:[%s2391_s3 + $0x188] sm:$0xff]   ;;  %v1937_v37 = vld [vmem:[%s2391_s3 + $0x100] sm:$0xff]   ;;  %v202_v44 = vld [vmem:[%s192_s6 + $0x18] sm:$0xff] }
  0x17   : > { %1793 = vmatpush3.bf16.msra.mxu1 %v1918_v12  ;;  %1772 = vmatprep.subr.bf16.mxu0 %v1919_v13  ;;  %v1938_v38 = vld [vmem:[%s2391_s3 + $0x180] sm:$0xff]   ;;  %v200_v39 = vld [vmem:[%s192_s6 + $0x8] sm:$0xff]  ;;  %v206_v45 = vld [vmem:[%s192_s6 + $0x38] sm:$0xff] }
  0x18   : > { %1794 = vmatprep.subr.bf16.mxu1 %v1920_v14  ;;  %v204_v40 = vld [vmem:[%s192_s6 + $0x28] sm:$0xff]  ;;  %v207_v41 = vld [vmem:[%s2389_s1] sm:$0xf]  ;;  %v201_v54 = vld [vmem:[%s192_s6 + $0x10] sm:$0xff] }
  0x19   : > { %v216_v42 = vrot.slane %v207_v41, %v215_v30  ;;  %v237_v43 = vld [vmem:[%s2390_s2] sm:$0xf]  ;;  %v224_v46 = vrot.slane %v207_v41, %v223_v32  ;;  %v212_v47 = vrot.slane %v207_v41, %v211_v34  ;;  %v220_v48 = vrot.slane %v207_v41, %v219_v36  ;;  %v205_v60 = vld [vmem:[%s192_s6 + $0x30] sm:$0xff]  ;;  %v1939_v1 = vld [vmem:[%s2391_s3 + $0x78] sm:$0xff]  }
  0x1a   : > { %1773 = vmatpush3.bf16.msra.mxu0 %v1921_v15  ;;  %v246_v49 = vrot.slane %v237_v43, %v215_v30  ;;  %v254_v50 = vrot.slane %v237_v43, %v223_v32  ;;  %v199_v51 = vld [vmem:[%s192_s6] sm:$0xff]  ;;  %v242_v53 = vrot.slane %v237_v43, %v211_v34  ;;  %v250_v55 = vrot.slane %v237_v43, %v219_v36  ;;  %v1940_v6 = vld [vmem:[%s2391_s3 + $0xf8] sm:$0xff]  }
  0x1b   : > { %1795 = vmatpush3.bf16.msra.mxu1 %v1922_v16  ;;  %1774 = vmatprep.subr.bf16.mxu0 %v1923_v17  ;;  %v203_v52 = vld [vmem:[%s192_s6 + $0x20] sm:$0xff]  ;;  %v230_v56 = vmul.f32 %v216_v42, %v200_v39  ;;  %v234_v57 = vmul.f32 %v216_v42, %v204_v40  ;;  %v232_v58 = vmul.f32 %v224_v46, %v202_v44 }
  0x1c   : > { %1796 = vmatprep.subr.bf16.mxu1 %v1924_v18  ;;  %v236_v59 = vmul.f32 %v224_v46, %v206_v45  ;;  %v229_v61 = vmul.f32 %v212_v47, %v199_v51  ;;  %v233_v62 = vmul.f32 %v212_v47, %v203_v52  ;;  %v231_v63 = vmul.f32 %v220_v48, %v201_v54 }
  0x1d   : > { %v235_v0 = vmul.f32 %v220_v48, %v205_v60  ;;  %v260_v2 = vadd.f32 %v246_v49, %v230_v56  ;;  %v264_v3 = vadd.f32 %v246_v49, %v234_v57  ;;  %v262_v4 = vadd.f32 %v254_v50, %v232_v58 }
  0x1e   : > { %1775 = vmatpush3.bf16.msra.mxu0 %v1925_v19  ;;  %v266_v5 = vadd.f32 %v254_v50, %v236_v59  ;;  %v259_v7 = vadd.f32 %v242_v53, %v229_v61  ;;  %v263_v8 = vadd.f32 %v242_v53, %v233_v62  ;;  %v261_v9 = vadd.f32 %v250_v55, %v231_v63 }
  0x1f   : > { %1797 = vmatpush3.bf16.msra.mxu1 %v1926_v21  ;;  %1776 = vmatprep.subr.bf16.mxu0 %v1927_v22  ;;  %v265_v10 = vadd.f32 %v250_v55, %v235_v0  ;;  %v268_v11 = vmax.f32 %v260_v2, 0.0  ;;  %v272_v12 = vmax.f32 %v264_v3, 0.0  ;;  %v270_v13 = vmax.f32 %v262_v4, 0.0  ;;  %v1941_v4 = vld [vmem:[%s2391_s3 + $0x38] sm:$0xff]  }
  0x20   : > { %1798 = vmatprep.subr.bf16.mxu1 %v1928_v23  ;;  %v274_v14 = vmax.f32 %v266_v5, 0.0  ;;  %v267_v15 = vmax.f32 %v259_v7, 0.0  ;;  %v271_v16 = vmax.f32 %v263_v8, 0.0  ;;  %v269_v17 = vmax.f32 %v261_v9, 0.0  ;;  %v1942_v7 = vld [vmem:[%s2391_s3 + $0xb8] sm:$0xff]   ;;  %v1943_v8 = vld [vmem:[%s2391_s3 + $0x70] sm:$0xff]  }
  0x21   : > { %v273_v18 = vmax.f32 %v265_v10, 0.0  ;;  %v297_v19 = vrot.slane %v268_v11, 7  ;;  %v302_v20 = vrot.slane %v272_v12, 7  ;;  %v299_v21 = vrot.slane %v270_v13, 7  ;;  %v1944_v12 = vld [vmem:[%s2391_s3 + $0xf0] sm:$0xff]  }
  0x22   : > { %1777 = vmatpush3.bf16.msra.mxu0 %v1929_v24  ;;  %v306_v22 = vrot.slane %v274_v14, 7  ;;  %v296_v23 = vrot.slane %v267_v15, 7  ;;  %v300_v24 = vrot.slane %v271_v16, 7  ;;  %v298_v25 = vrot.slane %v269_v17, 7  ;;  %v1945_v13 = vld [vmem:[%s2391_s3 + $0x30] sm:$0xff]   ;;  %v1947_v16 = vld [vmem:[%s2391_s3 + $0x68] sm:$0xff]  }
  0x23   : > { %1799 = vmatpush3.bf16.msra.mxu1 %v1930_v26  ;;  %1778 = vmatprep.subr.bf16.mxu0 %v1931_v27  ;;  %v304_v26 = vrot.slane %v273_v18, 7  ;;  %v2164_v27 = vsel %vm295_vm0, %v297_v19, %v302_v20  ;;  %321 = vst [vmem:[#allocation2] sm:$0xfe] %v297_v19  ;;  %329 = vst [vmem:[#allocation2 + $0x48] sm:$0x1] %v302_v20  ;;  %v1946_v17 = vld [vmem:[%s2391_s3 + $0xb0] sm:$0xff]  }
  0x24   : > { %1800 = vmatprep.subr.bf16.mxu1 %v1932_v28  ;;  %v2167_v28 = vsel %vm295_vm0, %v299_v21, %v306_v22  ;;  %323 = vst [vmem:[#allocation2 + $0x18] sm:$0xfe] %v299_v21  ;;  %331 = vst [vmem:[#allocation2 + $0x40] sm:$0x1] %v306_v22  ;;  %v1948_v18 = vld [vmem:[%s2391_s3 + $0xe8] sm:$0xff]   ;;  %v1951_v20 = vld [vmem:[%s2391_s3 + $0x60] sm:$0xff]  }
  0x25   : > { %320 = vst [vmem:[#allocation2 + $0x30] sm:$0xfe] %v296_v23  ;;  %328 = vst [vmem:[#allocation2 + $0x28] sm:$0x1] %v300_v24  ;;  %v2173_v30 = vsel %vm295_vm0, %v298_v25, %v304_v26  ;;  %v1949_v19 = vld [vmem:[%s2391_s3 + $0x28] sm:$0xff]   ;;  %v1952_v22 = vld [vmem:[%s2391_s3 + $0xe0] sm:$0xff]  }
  0x26   : > { %1779 = vmatpush3.bf16.msra.mxu0 %v1933_v29  ;;  %v2170_v29 = vsel %vm295_vm0, %v296_v23, %v300_v24  ;;  %322 = vst [vmem:[#allocation2 + $0x58] sm:$0xfe] %v298_v25  ;;  %330 = vst [vmem:[#allocation2 + $0x10] sm:$0x1] %v304_v26  ;;  %v1950_v21 = vld [vmem:[%s2391_s3 + $0xa8] sm:$0xff]   ;;  %v1953_v23 = vld [vmem:[%s2391_s3 + $0x20] sm:$0xff]  }
  0x27   : > { %1801 = vmatpush3.bf16.msra.mxu1 %v1934_v31  ;;  %1780 = vmatprep.subr.bf16.mxu0 %v1935_v33  ;;  %v1955_v24 = vld [vmem:[%s2391_s3 + $0x58] sm:$0xff]   ;;  %v1954_v25 = vld [vmem:[%s2391_s3 + $0xa0] sm:$0xff]  }
  0x28   : > { %1802 = vmatprep.subr.bf16.mxu1 %v1936_v35  ;;  %v1956_v26 = vld [vmem:[%s2391_s3 + $0xd8] sm:$0xff]  }
  0x2a   : > { %1781 = vmatpush3.bf16.msra.mxu0 %v1937_v37  ;;  %v409_v31 = vld [vmem:[#allocation2] sm:$0xfe]  ;;  %v413_v32 = vld [vmem:[#allocation2 + $0x48] sm:$0x1] }
  0x2b   : > { %1803 = vmatpush3.bf16.msra.mxu1 %v1938_v38  ;;  %1810 = vmatprep.subr.bf16.mxu0 %v1939_v1  ;;  %v411_v33 = vld [vmem:[#allocation2 + $0x18] sm:$0xfe]  ;;  %v417_v34 = vpack.c.bf16 %v2164_v27, %v409_v31  ;;  %v421_v35 = vpack.c.bf16 %v413_v32, %v413_v32  ;;  %v415_v36 = vld [vmem:[#allocation2 + $0x40] sm:$0x1] }
  0x2c   : > { %1832 = vmatprep.subr.bf16.mxu1 %v1940_v6  ;;  %v419_v37 = vpack.c.bf16 %v2167_v28, %v411_v33  ;;  %v408_v38 = vld [vmem:[#allocation2 + $0x30] sm:$0xfe]  ;;  %v412_v39 = vld [vmem:[#allocation2 + $0x28] sm:$0x1]  ;;  %v423_v40 = vpack.c.bf16 %v415_v36, %v415_v36  ;;  %v1957_v31 = vld [vmem:[%s2391_s3 + $0x18] sm:$0xff]  }
  0x2d   : > { %v416_v41 = vpack.c.bf16 %v2170_v29, %v408_v38  ;;  %v420_v42 = vpack.c.bf16 %v412_v39, %v412_v39  ;;  %v410_v43 = vld [vmem:[#allocation2 + $0x58] sm:$0xfe]  ;;  %v503_v44 = vshrl.u32 %v417_v34, 16  ;;  %v505_v45 = vshll.u32 %v417_v34, 16  ;;  %v414_v48 = vld [vmem:[#allocation2 + $0x10] sm:$0x1] }
  0x2e   : > { %v510_v46 = vshll.u32 %v421_v35, 16  ;;  %v527_v47 = vshrl.u32 %v419_v37, 16  ;;  %v529_v49 = vshll.u32 %v419_v37, 16  ;;  %v534_v50 = vshll.u32 %v423_v40, 16  ;;  %v333_v32 = vld [vmem:[#allocation2] sm:$0xff]  ;;  %v335_v33 = vld [vmem:[#allocation2 + $0x18] sm:$0xff] }
  0x2f   : > { %v491_v51 = vshrl.u32 %v416_v41, 16  ;;  %v493_v52 = vshll.u32 %v416_v41, 16  ;;  %v507_v53 = vrot.slane %v505_v45, 1  ;;  %v498_v55 = vshll.u32 %v420_v42, 16  ;;  %v1959_v34 = vld [vmem:[%s2391_s3 + $0x50] sm:$0xff]   ;;  %v1958_v37 = vld [vmem:[%s2391_s3 + $0x98] sm:$0xff]  }
  0x30   : > { %v512_v54 = vrot.slane %v510_v46, 1  ;;  %v418_v56 = vpack.c.bf16 %v2173_v30, %v410_v43  ;;  %v531_v57 = vrot.slane %v529_v49, 1  ;;  %v536_v58 = vrot.slane %v534_v50, 1  ;;  %v1960_v38 = vld [vmem:[%s2391_s3 + $0xd0] sm:$0xff]   ;;  %v1963_v40 = vld [vmem:[%s2391_s3 + $0x48] sm:$0xff]   ;;  %v1967_v45 = vld [vmem:[%s2391_s3 + $0x40] sm:$0xff]  }
  0x31   : > { %v495_v59 = vrot.slane %v493_v52, 1  ;;  %v422_v60 = vpack.c.bf16 %v414_v48, %v414_v48  ;;  %v508_v61 = vor.u32 %v507_v53, %v503_v44  ;;  %v500_v62 = vrot.slane %v498_v55, 1  ;;  %v1961_v39 = vld [vmem:[%s2391_s3 + $0x10] sm:$0xff]   ;;  %v1964_v42 = vld [vmem:[%s2391_s3 + $0xc8] sm:$0xff]   ;;  %v1968_v46 = vld [vmem:[%s2391_s3 + $0xc0] sm:$0xff]  }
  0x32   : > { %v515_v63 = vshrl.u32 %v418_v56, 16  ;;  %v517_v0 = vshll.u32 %v418_v56, 16  ;;  %v532_v1 = vor.u32 %v531_v57, %v527_v47  ;;  %v341_v35 = vpack.c.bf16 %v2164_v27, %v333_v32  ;;  %v1962_v41 = vld [vmem:[%s2391_s3 + $0x90] sm:$0xff]   ;;  %v1965_v43 = vld [vmem:[%s2391_s3 + $0x8] sm:$0xff]   ;;  %v1969_v47 = vld [vmem:[%s2391_s3] sm:$0xff]  }
  0x33   : > { %v496_v2 = vor.u32 %v495_v59, %v491_v51  ;;  %v522_v3 = vshll.u32 %v422_v60, 16  ;;  %v513_v5 = vsel %vm489_vm1, %v508_v61, %v512_v54  ;;  %v343_v36 = vpack.c.bf16 %v2167_v28, %v335_v33  ;;  %v1966_v44 = vld [vmem:[%s2391_s3 + $0x88] sm:$0xff]   ;;  %v332_v48 = vld [vmem:[#allocation2 + $0x30] sm:$0xff]  ;;  %v1970_v49 = vld [vmem:[%s2391_s3 + $0x80] sm:$0xff]  }
  0x34   : > { %v519_v6 = vrot.slane %v517_v0, 1  ;;  %766 = vmatprep.mubr.bf16.mxu0 %v513_v5  ;;  %v537_v9 = vsel %vm489_vm1, %v532_v1, %v536_v58  ;;  %v1971_v50 = vld [vmem:[%s2391_s3 + $0x278] sm:$0xff]   ;;  %v340_v52 = vpack.c.bf16 %v2170_v29, %v332_v48  ;;  %v1975_v55 = vld [vmem:[%s2391_s3 + $0x270] sm:$0xff]   ;;  %v1979_v60 = vld [vmem:[%s2391_s3 + $0x268] sm:$0xff]  }
  0x35   : > { %v501_v10 = vsel %vm489_vm1, %v496_v2, %v500_v62  ;;  %v524_v11 = vrot.slane %v522_v3, 1  ;;  %807 = vmatprep.mubr.bf16.mxu1 %v537_v9  ;;  %v334_v51 = vld [vmem:[#allocation2 + $0x58] sm:$0xff]  ;;  %v1976_v58 = vld [vmem:[%s2391_s3 + $0x2f0] sm:$0xff]   ;;  %v1980_v62 = vld [vmem:[%s2391_s3 + $0x2e8] sm:$0xff]  }
  0x36   : > { %767 = vmatmul.mubr.bf16.vlgmr.msra.gmra.mxu0 %v501_v10  ;;  %v520_v14 = vor.u32 %v519_v6, %v515_v63  ;;  %v1972_v53 = vld [vmem:[%s2391_s3 + $0x2f8] sm:$0xff]   ;;  %v342_v56 = vpack.c.bf16 %v2173_v30, %v334_v51  ;;  %v1977_v59 = vld [vmem:[%s2391_s3 + $0x230] sm:$0xff]   ;;  %v1981_v63 = vld [vmem:[%s2391_s3 + $0x228] sm:$0xff]  }
  0x37   : > { %1811 = vmatpush3.bf16.msra.mxu0 %v1941_v4  ;;  %1040 = vmatprep.mubr.bf16.mxu0 %v341_v35  ;;  %v1973_v54 = vld [vmem:[%s2391_s3 + $0x238] sm:$0xff]   ;;  %v1978_v61 = vld [vmem:[%s2391_s3 + $0x2b0] sm:$0xff]   ;;  %v1983_v0 = vld [vmem:[%s2391_s3 + $0x260] sm:$0xff]  }
  0x38   : > { %v525_v15 = vsel %vm489_vm1, %v520_v14, %v524_v11  ;;  %1812 = vmatprep.subr.bf16.mxu0 %v1943_v8  ;;  %v1974_v57 = vld [vmem:[%s2391_s3 + $0x2b8] sm:$0xff]   ;;  %v1982_v1 = vld [vmem:[%s2391_s3 + $0x2a8] sm:$0xff]   ;;  %v1984_v2 = vld [vmem:[%s2391_s3 + $0x2e0] sm:$0xff]  }
  0x39   : > { %808 = vmatmul.mubr.bf16.vlgmr.msra.gmra.mxu1 %v525_v15  ;;  %v1985_v3 = vld [vmem:[%s2391_s3 + $0x220] sm:$0xff]   ;;  %v1987_v4 = vld [vmem:[%s2391_s3 + $0x258] sm:$0xff]   ;;  %v1991_v8 = vld [vmem:[%s2391_s3 + $0x250] sm:$0xff]  }
  0x3a   : > { %1833 = vmatpush3.bf16.msra.mxu1 %v1942_v7  ;;  %1081 = vmatprep.mubr.bf16.mxu1 %v343_v36  ;;  %v1986_v5 = vld [vmem:[%s2391_s3 + $0x2a0] sm:$0xff]   ;;  %v1988_v6 = vld [vmem:[%s2391_s3 + $0x2d8] sm:$0xff]   ;;  %v1095_v10 = vld [vmem:[#allocation2 + $0x48] sm:$0x3] }
  0x3b   : > { %1834 = vmatprep.subr.bf16.mxu1 %v1944_v12  ;;  %1813 = vmatpush3.bf16.msra.mxu0 %v1945_v13  ;;  %v1989_v7 = vld [vmem:[%s2391_s3 + $0x218] sm:$0xff]   ;;  %v1091_v9 = vld [vmem:[#allocation2] sm:$0xfc]  ;;  %v1097_v13 = vld [vmem:[#allocation2 + $0x40] sm:$0x3]  ;;  %v1103_v15 = vpack.c.bf16 %v1095_v10, %v1095_v10 }
  0x3c   : > { %1814 = vmatprep.subr.bf16.mxu0 %v1947_v16  ;;  %v1099_v11 = vpack.c.bf16 %v2164_v27, %v1091_v9  ;;  %v1093_v12 = vld [vmem:[#allocation2 + $0x18] sm:$0xfc]  ;;  %v1993_v27 = vld [vmem:[%s2391_s3 + $0x210] sm:$0xff]   ;;  %v1997_v33 = vld [vmem:[%s2391_s3 + $0x208] sm:$0xff]  }
  0x3d   : > { %v1990_v14 = vld [vmem:[%s2391_s3 + $0x298] sm:$0xff]   ;;  %v1101_v16 = vpack.c.bf16 %v2167_v28, %v1093_v12  ;;  %v1184_v28 = vrot.slane %v1103_v15, 1 }
  0x3e   : > { %1835 = vmatpush3.bf16.msra.mxu1 %v1946_v17  ;;  %v1105_v17 = vpack.c.bf16 %v1097_v13, %v1097_v13  ;;  %v1092_v36 = vld [vmem:[#allocation2 + $0x58] sm:$0xfc] }
  0x3f   : > { %1836 = vmatprep.subr.bf16.mxu1 %v1948_v18  ;;  %1815 = vmatpush3.bf16.msra.mxu0 %v1949_v19  ;;  %v1992_v18 = vld [vmem:[%s2391_s3 + $0x2d0] sm:$0xff]   ;;  %v1183_v19 = vrot.slane %v1099_v11, 1 }
  0x40   : > { %1816 = vmatprep.subr.bf16.mxu0 %v1951_v20  ;;  %v1090_v20 = vld [vmem:[#allocation2 + $0x30] sm:$0xfc] }
  0x42   : > { %1837 = vmatpush3.bf16.msra.mxu1 %v1950_v21  ;;  %v1995_v21 = vld [vmem:[%s2391_s3 + $0x248] sm:$0xff]  }
  0x43   : > { %1838 = vmatprep.subr.bf16.mxu1 %v1952_v22  ;;  %1817 = vmatpush3.bf16.msra.mxu0 %v1953_v23  ;;  %v1189_v22 = vrot.slane %v1101_v16, 1  ;;  %v1190_v23 = vrot.slane %v1105_v17, 1 }
  0x44   : > { %1818 = vmatprep.subr.bf16.mxu0 %v1955_v24  ;;  %v1094_v24 = vld [vmem:[#allocation2 + $0x28] sm:$0x3] }
  0x45   : > { %v1191_v32 = vsel %vm1179_vm2, %v1189_v22, %v1190_v23  ;;  %v1102_v35 = vpack.c.bf16 %v1094_v24, %v1094_v24 }
  0x46   : > { %1839 = vmatpush3.bf16.msra.mxu1 %v1954_v25  ;;  %v1994_v25 = vld [vmem:[%s2391_s3 + $0x290] sm:$0xff]  }
  0x47   : > { %1840 = vmatprep.subr.bf16.mxu1 %v1956_v26  ;;  %1819 = vmatpush3.bf16.msra.mxu0 %v1957_v31  ;;  %v1996_v26 = vld [vmem:[%s2391_s3 + $0x2c8] sm:$0xff]   ;;  %v1185_v31 = vsel %vm1179_vm2, %v1183_v19, %v1184_v28 }
  0x48   : > { %1820 = vmatprep.subr.bf16.mxu0 %v1959_v34  ;;  %v1098_v34 = vpack.c.bf16 %v2170_v29, %v1090_v20  ;;  %v2000_v29 = vld [vmem:[%s2391_s3 + $0x2c0] sm:$0xff]  }
  0x4a   : > { %1841 = vmatpush3.bf16.msra.mxu1 %v1958_v37  ;;  %v1096_v37 = vld [vmem:[#allocation2 + $0x10] sm:$0x3] }
  0x4b   : > { %1842 = vmatprep.subr.bf16.mxu1 %v1960_v38  ;;  %1821 = vmatpush3.bf16.msra.mxu0 %v1961_v39  ;;  %v1999_v38 = vld [vmem:[%s2391_s3 + $0x240] sm:$0xff]   ;;  %v1998_v39 = vld [vmem:[%s2391_s3 + $0x288] sm:$0xff]  }
  0x4c   : > { %1822 = vmatprep.subr.bf16.mxu0 %v1963_v40  ;;  %v1100_v40 = vpack.c.bf16 %v2173_v30, %v1092_v36 }
  0x4e   : > { %1843 = vmatpush3.bf16.msra.mxu1 %v1962_v41  ;;  %v1104_v41 = vpack.c.bf16 %v1096_v37, %v1096_v37  ;;  %v1186_v30 = vrot.slane %v1100_v40, 1 }
  0x4f   : > { %1844 = vmatprep.subr.bf16.mxu1 %v1964_v42  ;;  %1823 = vmatpush3.bf16.msra.mxu0 %v1965_v43  ;;  %v2001_v42 = vld [vmem:[%s2391_s3 + $0x200] sm:$0xff]   ;;  %v1180_v43 = vrot.slane %v1098_v34, 1 }
  0x50   : > { %1824 = vmatprep.subr.bf16.mxu0 %v1967_v45  ;;  %v2002_v45 = vld [vmem:[%s2391_s3 + $0x280] sm:$0xff]  }
  0x52   : > { %1845 = vmatpush3.bf16.msra.mxu1 %v1966_v44  ;;  %v1181_v44 = vrot.slane %v1102_v35, 1 }
  0x53   : > { %1846 = vmatprep.subr.bf16.mxu1 %v1968_v46  ;;  %1825 = vmatpush3.bf16.msra.mxu0 %v1969_v47  ;;  %v1187_v46 = vrot.slane %v1104_v41, 1 }
  0x54   : > { %1854 = vmatprep.subr.bf16.mxu0 %v1971_v50  ;;  %v1182_v47 = vsel %vm1179_vm2, %v1180_v43, %v1181_v44 }
  0x55   : > { %v1188_v48 = vsel %vm1179_vm2, %v1186_v30, %v1187_v46 }
  0x56   : > { %1847 = vmatpush3.bf16.msra.mxu1 %v1970_v49  ;;  %1041 = vmatmul.mubr.bf16.vlgmr.msra.gmra.mxu0 %v340_v52 }
  0x57   : > { %1876 = vmatprep.subr.bf16.mxu1 %v1972_v53  ;;  %1855 = vmatpush3.bf16.msra.mxu0 %v1973_v54 }
  0x58   : > { %1856 = vmatprep.subr.bf16.mxu0 %v1975_v55  ;;  %1420 = vmatprep.mubr.bf16.mxu0 %v1185_v31 }
  0x59   : > { %1082 = vmatmul.mubr.bf16.vlgmr.msra.gmra.mxu1 %v342_v56 }
  0x5a   : > { %1877 = vmatpush3.bf16.msra.mxu1 %v1974_v57  ;;  %1461 = vmatprep.mubr.bf16.mxu1 %v1191_v32 }
  0x5b   : > { %1878 = vmatprep.subr.bf16.mxu1 %v1976_v58  ;;  %1857 = vmatpush3.bf16.msra.mxu0 %v1977_v59 }
  0x5c   : > { %1858 = vmatprep.subr.bf16.mxu0 %v1979_v60 }
  0x5e   : > { %1879 = vmatpush3.bf16.msra.mxu1 %v1978_v61 }
  0x5f   : > { %1880 = vmatprep.subr.bf16.mxu1 %v1980_v62  ;;  %1859 = vmatpush3.bf16.msra.mxu0 %v1981_v63 }
  0x60   : > { %1860 = vmatprep.subr.bf16.mxu0 %v1983_v0 }
  0x62   : > { %1881 = vmatpush3.bf16.msra.mxu1 %v1982_v1 }
  0x63   : > { %1882 = vmatprep.subr.bf16.mxu1 %v1984_v2  ;;  %1861 = vmatpush3.bf16.msra.mxu0 %v1985_v3 }
  0x64   : > { %1862 = vmatprep.subr.bf16.mxu0 %v1987_v4 }
  0x66   : > { %1883 = vmatpush3.bf16.msra.mxu1 %v1986_v5 }
  0x67   : > { %1884 = vmatprep.subr.bf16.mxu1 %v1988_v6  ;;  %1863 = vmatpush3.bf16.msra.mxu0 %v1989_v7 }
  0x68   : > { %1864 = vmatprep.subr.bf16.mxu0 %v1991_v8 }
  0x6a   : > { %1885 = vmatpush3.bf16.msra.mxu1 %v1990_v14 }
  0x6b   : > { %1886 = vmatprep.subr.bf16.mxu1 %v1992_v18  ;;  %1865 = vmatpush3.bf16.msra.mxu0 %v1993_v27 }
  0x6c   : > { %1866 = vmatprep.subr.bf16.mxu0 %v1995_v21 }
  0x6e   : > { %1887 = vmatpush3.bf16.msra.mxu1 %v1994_v25 }
  0x6f   : > { %1888 = vmatprep.subr.bf16.mxu1 %v1996_v26  ;;  %1867 = vmatpush3.bf16.msra.mxu0 %v1997_v33 }
  0x70   : > { %1868 = vmatprep.subr.bf16.mxu0 %v1999_v38 }
  0x72   : > { %1889 = vmatpush3.bf16.msra.mxu1 %v1998_v39 }
  0x73   : > { %1890 = vmatprep.subr.bf16.mxu1 %v2000_v29  ;;  %1869 = vmatpush3.bf16.msra.mxu0 %v2001_v42 }
  0x76   : > { %1891 = vmatpush3.bf16.msra.mxu1 %v2002_v45  ;;  %1421 = vmatmul.mubr.bf16.vlgmr.msra.gmra.mxu0 %v1182_v47 }
  0x79   : > { %1462 = vmatmul.mubr.bf16.vlgmr.msra.gmra.mxu1 %v1188_v48 }
  0xf6   : > { %v1782_v49 = vpop.f32.mrf.mxu0 }
  0xf8   : > { %v1783_v51 = vpop.f32.mrf.mxu0 }
  0xf9   : > { %v1804_v50 = vpop.f32.mrf.mxu1  ;;  %v1784_v63 = vadd.f32 %v1783_v51, %v1782_v49 }
  0xfa   : > { %v1785_v53 = vpop.f32.mrf.mxu0 }
  0xfb   : > { %v1805_v52 = vpop.f32.mrf.mxu1 }
  0xfc   : > { %v1786_v55 = vpop.f32.mrf.mxu0  ;;  %v1806_v0 = vadd.f32 %v1805_v52, %v1804_v50 }
  0xfd   : > { %v1807_v54 = vpop.f32.mrf.mxu1  ;;  %v1787_v6 = vadd.f32 %v1786_v55, %v1785_v53 }
  0xfe   : > { %v810_v5 = vadd.f32 %v1806_v0, %v1784_v63 }
  0xff   : > { %v1808_v57 = vpop.f32.mrf.mxu1 }
 0x100   : > { %v1809_v7 = vadd.f32 %v1808_v57, %v1807_v54 }
 0x102   : > { %v813_v15 = vadd.f32 %v1809_v7, %v1787_v6 }
 0x116   : > { %v1826_v56 = vpop.f32.mrf.mxu0 }
 0x118   : > { %v1827_v59 = vpop.f32.mrf.mxu0 }
 0x119   : > { %v1848_v58 = vpop.f32.mrf.mxu1  ;;  %v1828_v2 = vadd.f32 %v1827_v59, %v1826_v56 }
 0x11a   : > { %v1829_v61 = vpop.f32.mrf.mxu0 }
 0x11b   : > { %v1849_v60 = vpop.f32.mrf.mxu1  ;;  %v1043_v10 = vadd.f32 %v1828_v2, %v810_v5 }
 0x11c   : > { %v1830_v1 = vpop.f32.mrf.mxu0  ;;  %v1850_v16 = vadd.f32 %v1849_v60, %v1848_v58 }
 0x11d   : > { %v1851_v62 = vpop.f32.mrf.mxu1  ;;  %v1831_v11 = vadd.f32 %v1830_v1, %v1829_v61 }
 0x11e   : > { %v1084_v19 = vadd.f32 %v1850_v16, %v1043_v10 }
 0x11f   : > { %v1852_v4 = vpop.f32.mrf.mxu1  ;;  %v1046_v20 = vadd.f32 %v1831_v11, %v813_v15 }
 0x120   : > { %v1853_v23 = vadd.f32 %v1852_v4, %v1851_v62 }
 0x122   : > { %v1087_v26 = vadd.f32 %v1853_v23, %v1046_v20 }
 0x136   : > { %v1870_v3 = vpop.f32.mrf.mxu0 }
 0x138   : > { %v1871_v8 = vpop.f32.mrf.mxu0 }
 0x139   : > { %v1892_v9 = vpop.f32.mrf.mxu1  ;;  %v1872_v12 = vadd.f32 %v1871_v8, %v1870_v3 }
 0x13a   : > { %v1873_v13 = vpop.f32.mrf.mxu0 }
 0x13b   : > { %v1893_v14 = vpop.f32.mrf.mxu1 }
 0x13c   : > { %v1894_v17 = vadd.f32 %v1893_v14, %v1892_v9  ;;  %v1874_v18 = vpop.f32.mrf.mxu0 }
 0x13d   : > { %v1895_v27 = vpop.f32.mrf.mxu1  ;;  %v1875_v28 = vadd.f32 %v1874_v18, %v1873_v13 }
 0x13e   : > { %v1464_v21 = vadd.f32 %v1894_v17, %v1872_v12 }
 0x13f   : > { %v1896_v22 = vpop.f32.mrf.mxu1 }
 0x140   : > { %v1470_v24 = vadd.f32 %v1464_v21, %v1084_v19  ;;  %v1897_v25 = vadd.f32 %v1896_v22, %v1895_v27 }
 0x142   : > { %1472 = vst [vmem:[%s197_s28] sm:$0xff] %v1470_v24  ;;  %v1467_v31 = vadd.f32 %v1897_v25, %v1875_v28 }
 0x144   : > { %v1471_v32 = vadd.f32 %v1467_v31, %v1087_v26 }
 0x146   : > { %1473 = vst [vmem:[%s197_s28 + $0x8] sm:$0xff] %v1471_v32 }
 0x147 PF: > { %s14_s15 = sadd.s32 1, %s2009_s15  }
 0x148   : > { %p11_p4 = scmp.ge.s32.totalorder %s14_s15, 4  }
 0x14a   :  { %13 = sbr.rel (!%p11_p4) target bundleno = 1 (0x1), region = 68 }

</bundles_post_ra>
